<compile_context>
chip_gen: v7x
topology: tpu7x:2x2x1
jax: 0.10.0
libtpu: 0.0.40
codegen_flags: <defaults>
</compile_context>

<pallas_src>
import jax
import jax.numpy as jnp
from jax.experimental import pallas as pl
from jax.experimental.pallas import tpu as pltpu

NPAD = 128  # fc3 weight padded out to one full lane group for the MXU


def valuenet_kernel(x_ref, w1_ref, b1_ref, w2_ref, b2_ref, w3_ref, b3_ref, o_ref):
    # fc1 + ReLU: bf16 x bf16 on the MXU, f32 accumulation; bias/ReLU epilogue in f32.
    x = x_ref[...].astype(jnp.bfloat16)                       # (TM, state_dim)
    h1 = jnp.dot(x, w1_ref[...], preferred_element_type=jnp.float32)
    h1 = jnp.maximum(h1 + b1_ref[...], 0.0)                   # (TM, 512) f32
    # fc2 + ReLU
    h2 = jnp.dot(h1.astype(jnp.bfloat16), w2_ref[...],
                 preferred_element_type=jnp.float32)
    h2 = jnp.maximum(h2 + b2_ref[...], 0.0)                   # (TM, 1024) f32
    # fc3 (no activation): 128-lane padded MXU matmul, keep only column 0.
    v = jnp.dot(h2.astype(jnp.bfloat16), w3_ref[...],
                preferred_element_type=jnp.float32)           # (TM, 128) f32
    o_ref[...] = v[:, :1] + b3_ref[...]                       # (TM, 1) f32


def prepare_params(params):
    """One-time parameter preprocessing (done OUTSIDE the per-call hot path).

    - cast weights to bf16 (halves HBM->VMEM weight traffic, native MXU dtype)
    - pad fc3 weight to 128 output columns (clean MXU tile; kernel slices col 0)
    - reshape biases to (1, H) f32
    """
    w1, b1, w2, b2, w3, b3 = params
    H1, H2 = w1.shape[1], w2.shape[1]
    w3p = jnp.zeros((H2, NPAD), jnp.float32).at[:, :1].set(w3)
    return (
        w1.astype(jnp.bfloat16),
        b1.reshape(1, H1).astype(jnp.float32),
        w2.astype(jnp.bfloat16),
        b2.reshape(1, H2).astype(jnp.float32),
        w3p.astype(jnp.bfloat16),
        b3.reshape(1, 1).astype(jnp.float32),
    )


def _pick_tm(batch):
    """Rows per grid step.

    * batch <= 8: single full-array block (always a legal block shape).
    * otherwise: split into >= 2 grid steps so the "parallel" batch axis can be
      sharded across both v7x TensorCores; cap at 512 rows to amortize the
      ~0.35us per-step pipeline overhead while the per-tile working set
      (x + h1 + h2 + resident bf16 weights) stays far below the scoped-VMEM limit.
    """
    if batch <= 8:
        return batch
    half = (batch + 1) // 2
    tm = ((half + 7) // 8) * 8          # round up to a sublane multiple
    return min(512, tm)


def value_net_forward(state, prepped):
    """state: [B, state_dim] float32. prepped: output of prepare_params.
    Returns [B, 1] float32."""
    w1, b1, w2, b2, w3p, b3 = prepped
    B, state_dim = state.shape
    H1, H2 = w1.shape[1], w2.shape[1]
    tm = _pick_tm(B)
    grid = (pl.cdiv(B, tm),)

    return pl.pallas_call(
        valuenet_kernel,
        out_shape=jax.ShapeDtypeStruct((B, 1), jnp.float32),
        grid=grid,
        in_specs=[
            pl.BlockSpec((tm, state_dim), lambda i: (i, 0)),   # x: batch-tiled
            pl.BlockSpec((state_dim, H1), lambda i: (0, 0)),   # w1: VMEM-resident
            pl.BlockSpec((1, H1), lambda i: (0, 0)),           # b1
            pl.BlockSpec((H1, H2), lambda i: (0, 0)),          # w2
            pl.BlockSpec((1, H2), lambda i: (0, 0)),           # b2
            pl.BlockSpec((H2, NPAD), lambda i: (0, 0)),        # w3 (padded to 128)
            pl.BlockSpec((1, 1), lambda i: (0, 0)),            # b3
        ],
        out_specs=pl.BlockSpec((tm, 1), lambda i: (i, 0)),
        compiler_params=pltpu.CompilerParams(
            dimension_semantics=("parallel",)),
    )(state, w1, b1, w2, b2, w3p, b3)


def init_params(key, state_dim):
    """Deterministic synthetic init (PyTorch-style uniform fan-in scaling)."""
    ks = jax.random.split(key, 6)

    def lin(kw, kb, fan_in, fan_out):
        bound = 1.0 / jnp.sqrt(fan_in)
        w = jax.random.uniform(kw, (fan_in, fan_out), jnp.float32, -bound, bound)
        b = jax.random.uniform(kb, (fan_out,), jnp.float32, -bound, bound)
        return w, b

    w1, b1 = lin(ks[0], ks[1], state_dim, 512)
    w2, b2 = lin(ks[2], ks[3], 512, 1024)
    w3, b3 = lin(ks[4], ks[5], 1024, 1)
    return (w1, b1, w2, b2, w3, b3)


if __name__ == "__main__":
    key = jax.random.PRNGKey(0)
    k_state, k_params = jax.random.split(key)

    B, STATE_DIM = 8, 32
    state = jax.random.normal(k_state, (B, STATE_DIM), jnp.float32)
    params = init_params(k_params, STATE_DIM)
    prepped = prepare_params(params)  # one-time, outside the hot path

    out = value_net_forward(state, prepped)
    out = jax.block_until_ready(out)

    # Pure-JAX reference of the same quantized math (bf16 x bf16 matmuls with f32
    # accumulation, f32 bias/ReLU epilogues).
    w1, b1, w2, b2, w3p, b3 = prepped
    ref = jnp.dot(state.astype(jnp.bfloat16), w1,
                  preferred_element_type=jnp.float32) + b1
    ref = jnp.maximum(ref, 0.0)
    ref = jnp.dot(ref.astype(jnp.bfloat16), w2,
                  preferred_element_type=jnp.float32) + b2
    ref = jnp.maximum(ref, 0.0)
    ref = jnp.dot(ref.astype(jnp.bfloat16), w3p,
                  preferred_element_type=jnp.float32)[:, :1] + b3

    assert out.shape == (B, 1)
    assert jnp.allclose(out, ref, atol=2e-3, rtol=2e-3)

    print("KERNEL_OK")
</pallas_src>

<mosaic_0001>
module attributes {stable_mosaic.version = 11 : i64} {
  func.func @valuenet_kernel(%arg0: i32, %arg1: memref<8x32xf32, #tpu.memory_space<vmem>>, %arg2: memref<32x512xbf16, #tpu.memory_space<vmem>>, %arg3: memref<1x512xf32, #tpu.memory_space<vmem>>, %arg4: memref<512x1024xbf16, #tpu.memory_space<vmem>>, %arg5: memref<1x1024xf32, #tpu.memory_space<vmem>>, %arg6: memref<1024x128xbf16, #tpu.memory_space<vmem>>, %arg7: memref<1x1xf32, #tpu.memory_space<vmem>>, %arg8: memref<8x1xf32, #tpu.memory_space<vmem>>) attributes {dimension_semantics = [#tpu.dimension_semantics<parallel>], iteration_bounds = array<i64: 1>, scalar_prefetch = 0 : i64, scratch_operands = 0 : i64, tpu.core_type = #tpu.core_type<tc>, window_params = [{transform_indices = @transform_0, window_bounds = array<i64: 8, 32>}, {pipeline_mode = #tpu.pipeline_mode<synchronous>, transform_indices = @transform_1, window_bounds = array<i64: 32, 512>}, {pipeline_mode = #tpu.pipeline_mode<synchronous>, transform_indices = @transform_2, window_bounds = array<i64: 1, 512>}, {pipeline_mode = #tpu.pipeline_mode<synchronous>, transform_indices = @transform_3, window_bounds = array<i64: 512, 1024>}, {pipeline_mode = #tpu.pipeline_mode<synchronous>, transform_indices = @transform_4, window_bounds = array<i64: 1, 1024>}, {pipeline_mode = #tpu.pipeline_mode<synchronous>, transform_indices = @transform_5, window_bounds = array<i64: 1024, 128>}, {pipeline_mode = #tpu.pipeline_mode<synchronous>, transform_indices = @transform_6, window_bounds = array<i64: 1, 1>}, {transform_indices = @transform_7, window_bounds = array<i64: 8, 1>}]} {
    %c0 = arith.constant 0 : index
    %c0_0 = arith.constant 0 : index
    %0 = vector.load %arg1[%c0, %c0_0] : memref<8x32xf32, #tpu.memory_space<vmem>>, vector<8x32xf32>
    %1 = arith.truncf %0 : vector<8x32xf32> to vector<8x32xbf16>
    %c0_1 = arith.constant 0 : index
    %c0_2 = arith.constant 0 : index
    %2 = vector.load %arg2[%c0_1, %c0_2] : memref<32x512xbf16, #tpu.memory_space<vmem>>, vector<32x512xbf16>
    %cst = arith.constant dense<0.000000e+00> : vector<8x512xf32>
    %3 = tpu.matmul %1, %2, %cst {dimension_numbers = #tpu.dot_dimension_numbers<[1], [0], [0], [1], [0, 0, 1, 1], [], []>} : vector<8x32xbf16>, vector<32x512xbf16>, vector<8x512xf32> -> vector<8x512xf32>
    %c0_3 = arith.constant 0 : index
    %c0_4 = arith.constant 0 : index
    %4 = vector.load %arg3[%c0_3, %c0_4] : memref<1x512xf32, #tpu.memory_space<vmem>>, vector<1x512xf32>
    %5 = vector.broadcast %4 : vector<1x512xf32> to vector<8x512xf32>
    %6 = arith.addf %3, %5 : vector<8x512xf32>
    %cst_5 = arith.constant 0.000000e+00 : f32
    %7 = vector.broadcast %cst_5 : f32 to vector<8x512xf32>
    %8 = arith.maximumf %6, %7 : vector<8x512xf32>
    %9 = arith.truncf %8 : vector<8x512xf32> to vector<8x512xbf16>
    %c0_6 = arith.constant 0 : index
    %c0_7 = arith.constant 0 : index
    %10 = vector.load %arg4[%c0_6, %c0_7] : memref<512x1024xbf16, #tpu.memory_space<vmem>>, vector<512x1024xbf16>
    %cst_8 = arith.constant dense<0.000000e+00> : vector<8x1024xf32>
    %11 = tpu.matmul %9, %10, %cst_8 {dimension_numbers = #tpu.dot_dimension_numbers<[1], [0], [0], [1], [0, 0, 1, 1], [], []>} : vector<8x512xbf16>, vector<512x1024xbf16>, vector<8x1024xf32> -> vector<8x1024xf32>
    %c0_9 = arith.constant 0 : index
    %c0_10 = arith.constant 0 : index
    %12 = vector.load %arg5[%c0_9, %c0_10] : memref<1x1024xf32, #tpu.memory_space<vmem>>, vector<1x1024xf32>
    %13 = vector.broadcast %12 : vector<1x1024xf32> to vector<8x1024xf32>
    %14 = arith.addf %11, %13 : vector<8x1024xf32>
    %cst_11 = arith.constant 0.000000e+00 : f32
    %15 = vector.broadcast %cst_11 : f32 to vector<8x1024xf32>
    %16 = arith.maximumf %14, %15 : vector<8x1024xf32>
    %17 = arith.truncf %16 : vector<8x1024xf32> to vector<8x1024xbf16>
    %c0_12 = arith.constant 0 : index
    %c0_13 = arith.constant 0 : index
    %18 = vector.load %arg6[%c0_12, %c0_13] : memref<1024x128xbf16, #tpu.memory_space<vmem>>, vector<1024x128xbf16>
    %cst_14 = arith.constant dense<0.000000e+00> : vector<8x128xf32>
    %19 = tpu.matmul %17, %18, %cst_14 {dimension_numbers = #tpu.dot_dimension_numbers<[1], [0], [0], [1], [0, 0, 1, 1], [], []>} : vector<8x1024xbf16>, vector<1024x128xbf16>, vector<8x128xf32> -> vector<8x128xf32>
    %20 = vector.extract_strided_slice %19 {offsets = [0, 0], sizes = [8, 1], strides = [1, 1]} : vector<8x128xf32> to vector<8x1xf32>
    %c0_15 = arith.constant 0 : index
    %c0_16 = arith.constant 0 : index
    %21 = vector.load %arg7[%c0_15, %c0_16] : memref<1x1xf32, #tpu.memory_space<vmem>>, vector<1x1xf32>
    %22 = vector.broadcast %21 : vector<1x1xf32> to vector<8x1xf32>
    %23 = arith.addf %20, %22 : vector<8x1xf32>
    %c0_17 = arith.constant 0 : index
    %c0_18 = arith.constant 0 : index
    %24 = vector.load %arg8[%c0_17, %c0_18] : memref<8x1xf32, #tpu.memory_space<vmem>>, vector<8x1xf32>
    tpu.vector_store %arg8[%c0_17, %c0_18], %23 {strides = array<i32>} : memref<8x1xf32, #tpu.memory_space<vmem>>, vector<8x1xf32>,
    return
  }
  func.func @transform_0(%arg0: i32) -> (i32, i32) {
    %c0_i32 = arith.constant 0 : i32
    %c0_i32_0 = arith.constant 0 : i32
    return %arg0, %c0_i32 : i32, i32
  }
  func.func @transform_1(%arg0: i32) -> (i32, i32) {
    %c0_i32 = arith.constant 0 : i32
    %c0_i32_0 = arith.constant 0 : i32
    %c0_i32_1 = arith.constant 0 : i32
    return %c0_i32, %c0_i32_0 : i32, i32
  }
  func.func @transform_2(%arg0: i32) -> (i32, i32) {
    %c0_i32 = arith.constant 0 : i32
    %c0_i32_0 = arith.constant 0 : i32
    %c0_i32_1 = arith.constant 0 : i32
    return %c0_i32, %c0_i32_0 : i32, i32
  }
  func.func @transform_3(%arg0: i32) -> (i32, i32) {
    %c0_i32 = arith.constant 0 : i32
    %c0_i32_0 = arith.constant 0 : i32
    %c0_i32_1 = arith.constant 0 : i32
    return %c0_i32, %c0_i32_0 : i32, i32
  }
  func.func @transform_4(%arg0: i32) -> (i32, i32) {
    %c0_i32 = arith.constant 0 : i32
    %c0_i32_0 = arith.constant 0 : i32
    %c0_i32_1 = arith.constant 0 : i32
    return %c0_i32, %c0_i32_0 : i32, i32
  }
  func.func @transform_5(%arg0: i32) -> (i32, i32) {
    %c0_i32 = arith.constant 0 : i32
    %c0_i32_0 = arith.constant 0 : i32
    %c0_i32_1 = arith.constant 0 : i32
    return %c0_i32, %c0_i32_0 : i32, i32
  }
  func.func @transform_6(%arg0: i32) -> (i32, i32) {
    %c0_i32 = arith.constant 0 : i32
    %c0_i32_0 = arith.constant 0 : i32
    %c0_i32_1 = arith.constant 0 : i32
    return %c0_i32, %c0_i32_0 : i32, i32
  }
  func.func @transform_7(%arg0: i32) -> (i32, i32) {
    %c0_i32 = arith.constant 0 : i32
    %c0_i32_0 = arith.constant 0 : i32
    return %arg0, %c0_i32 : i32, i32
  }
}

</mosaic_0001>

<bundles_post_ra>
// kernel: tpu_custom_call.1
= control target key start
LH: loop header
LB: loop body
LE: loop exit
PB: predicated region body
PF: predicated region fallthrough
CT: control target
= control target key end

     0   :  { %s3665_s0 = inlined_call_operand.hbm [shape: f32[8,32], index: 0, kind: input, shape index: {}]   ;;  %s3666_s1 = inlined_call_operand.hbm [shape: bf16[32,512], index: 1, kind: input, shape index: {}]   ;;  %s3667_s2 = inlined_call_operand.vmem [shape: f32[1,512], index: 2, kind: input, shape index: {}]   ;;  %s3668_s3 = inlined_call_operand.hbm [shape: bf16[512,1024], index: 3, kind: input, shape index: {}]   ;;  %s3669_s4 = inlined_call_operand.vmem [shape: f32[1,1024], index: 4, kind: input, shape index: {}]   ;;  %s3670_s5 = inlined_call_operand.hbm [shape: bf16[1024,128], index: 5, kind: input, shape index: {}]   ;;  %s3671_s6 = inlined_call_operand.<no memory space> [shape: f32[1,1], index: 6, kind: input, shape index: {}]   ;;  %s3672_s7 = inlined_call_operand.vmem [shape: f32[8,1], index: 7, kind: output, shape index: {}]  }
   0x1   :  { %v12_v0 = vstv %s3671_s6 }
   0x2   :  { %13 = vst [vmem:[#allocation2] sm:$0x1] %v12_v0 }
   0x3   :  { %14 = vsyncpa [#allocation4], 0 }
   0x4   :  { %15 = vsyncpa [#allocation6], 0 }
   0x5   :  { %16 = vsyncpa [#allocation9], 0  ;;  %s3483_s26 = smov [#allocation5]   ;;  %s3389_s30 = scalar_lea.hbm %s3666_s1, 1024 }
   0x6   :  { %s32_s27 = sshll.u32 %s3483_s26, 4  ;;  %p3390_p0 = scmp.ne.s32.totalorder %s3666_s1, %s3389_s30  ;;  %s33_s27 = int_to_ptr.vmem [resolvable:$true] %s32_s27 }
   0x7   :  { %p3393_p1 = scmp.lt.u32.totalorder %s3389_s30, %s3666_s1 }
   0x9   :  { %p3395_p2 = pnand %p3393_p1, %p3390_p0 }
   0xb   :  { %3398 = shalt.err (!%p3395_p2)
}
   0xc   :  { %s3399_s6 = scalar_lea.vmem %s33_s27, 1024  ;;  %p3404_p4 = scmp.lt.s32.totalorder %s33_s27, %s33_s27 }
   0xd   :  { %p3400_p3 = scmp.ne.s32.totalorder %s33_s27, %s3399_s6  ;;  %p3405_p5 = scmp.lt.s32.totalorder %s3399_s6, %s3399_s6 }
   0xf   :  { %p3406_p6 = por %p3405_p5, %p3404_p4 }
  0x11   :  { %p3407_p7 = pnand %p3406_p6, %p3400_p3 }
  0x13   :  { %3410 = shalt.err (!%p3407_p7)
}
  0x14   :  { %s3484_s12 = smov 256   ;;  %s3485_s13 = smov 16  }
  0x15   :  { %38 = dma.hbm_to_vmem [thread:$0]  %s3666_s1, 1024, %s33_s27, [#allocation6], %s3484_s12, %s3484_s12, %s3485_s13  }
  0x16   :  { %s3486_s16 = smov [#allocation3]   ;;  %s3487_s18 = smov [#allocation7]  }
  0x17   :  { %s23_s17 = sshll.u32 %s3486_s16, 4  ;;  %s46_s19 = sshll.u32 %s3487_s18, 4  ;;  %s24_s17 = int_to_ptr.vmem [resolvable:$true] %s23_s17  ;;  %s47_s19 = int_to_ptr.vmem [resolvable:$true] %s46_s19 }
  0x18   :  { %s3411_s22 = scalar_lea.hbm %s3665_s0, 128 }
  0x19   :  { %p3412_p8 = scmp.ne.s32.totalorder %s3665_s0, %s3411_s22  ;;  %p3415_p9 = scmp.lt.u32.totalorder %s3411_s22, %s3665_s0 }
  0x1b   :  { %p3417_p10 = pnand %p3415_p9, %p3412_p8 }
  0x1d   :  { %3420 = shalt.err (!%p3417_p10)
}
  0x1e   :  { %s3421_s1 = scalar_lea.vmem %s24_s17, 128  ;;  %p3426_p12 = scmp.lt.s32.totalorder %s24_s17, %s24_s17 }
  0x1f   :  { %p3422_p11 = scmp.ne.s32.totalorder %s24_s17, %s3421_s1  ;;  %p3427_p13 = scmp.lt.s32.totalorder %s3421_s1, %s3421_s1 }
  0x21   :  { %p3428_p0 = por %p3427_p13, %p3426_p12 }
  0x23   :  { %p3429_p1 = pnand %p3428_p0, %p3422_p11 }
  0x25   :  { %3432 = shalt.err (!%p3429_p1)
}
  0x26   :  { %26 = dma.hbm_to_vmem [thread:$0]  %s3665_s0, 128, %s24_s17, [#allocation4]  }
  0x27   :  { %s3433_s8 = scalar_lea.hbm %s3668_s3, 32768 }
  0x28   :  { %p3434_p2 = scmp.ne.s32.totalorder %s3668_s3, %s3433_s8  ;;  %p3437_p3 = scmp.lt.u32.totalorder %s3433_s8, %s3668_s3 }
  0x2a   :  { %p3439_p4 = pnand %p3437_p3, %p3434_p2 }
  0x2c   :  { %3442 = shalt.err (!%p3439_p4)
}
  0x2d   :  { %s3443_s12 = scalar_lea.vmem %s47_s19, 32768  ;;  %p3448_p6 = scmp.lt.s32.totalorder %s47_s19, %s47_s19 }
  0x2e   :  { %p3444_p5 = scmp.ne.s32.totalorder %s47_s19, %s3443_s12  ;;  %p3449_p7 = scmp.lt.s32.totalorder %s3443_s12, %s3443_s12 }
  0x30   :  { %p3450_p8 = por %p3449_p7, %p3448_p6 }
  0x32   :  { %p3451_p9 = pnand %p3450_p8, %p3444_p5 }
  0x34   :  { %3454 = shalt.err (!%p3451_p9)
}
  0x35   :  { %s3488_s0 = smov 512   ;;  %s3489_s13 = smov 32  }
  0x36   :  { %52 = dma.hbm_to_vmem [thread:$0]  %s3668_s3, 32768, %s47_s19, [#allocation6], %s3488_s0, %s3488_s0, %s3489_s13  }
  0x37   :  { %s3490_s16 = smov [#allocation8]   ;;  %s3455_s21 = scalar_lea.hbm %s3670_s5, 8192 }
  0x38   :  { %s60_s17 = sshll.u32 %s3490_s16, 4  ;;  %p3456_p10 = scmp.ne.s32.totalorder %s3670_s5, %s3455_s21  ;;  %s61_s17 = int_to_ptr.vmem [resolvable:$true] %s60_s17 }
  0x39   :  { %p3459_p11 = scmp.lt.u32.totalorder %s3455_s21, %s3670_s5 }
  0x3b   :  { %p3461_p12 = pnand %p3459_p11, %p3456_p10 }
  0x3d   :  { %3464 = shalt.err (!%p3461_p12)
}
  0x3e   :  { %s3465_s26 = scalar_lea.vmem %s61_s17, 8192  ;;  %p3470_p0 = scmp.lt.s32.totalorder %s61_s17, %s61_s17 }
  0x3f   :  { %p3466_p13 = scmp.ne.s32.totalorder %s61_s17, %s3465_s26  ;;  %p3471_p1 = scmp.lt.s32.totalorder %s3465_s26, %s3465_s26 }
  0x41   :  { %p3472_p2 = por %p3471_p1, %p3470_p0 }
  0x43   :  { %p3473_p3 = pnand %p3472_p2, %p3466_p13 }
  0x45   :  { %3476 = shalt.err (!%p3473_p3)
}
  0x46   :  { %s3491_s3 = smov 64   ;;  %s3492_s19 = smov 4  }
  0x47   :  { %66 = dma.hbm_to_vmem [thread:$0]  %s3670_s5, 8192, %s61_s17, [#allocation9], %s3491_s3, %s3491_s3, %s3492_s19  }
  0x48   :  { %3477 = dma.done.wait [#allocation4], 128  }
  0x49   :  { %3478 = vsyncadd [#allocation4], 4294967168 }
  0x4a   :  { %3479 = dma.done.wait [#allocation6], 33792  }
  0x4b   :  { %3480 = vsyncadd [#allocation6], 4294933504 }
  0x4c   :  { %3481 = dma.done.wait [#allocation9], 8192  }
  0x4d   :  { %3482 = vsyncadd [#allocation9], 4294959104  ;;  %v3493_v1 = vmov 0   ;;  %v3313_v2 = vld [vmem:[#allocation5 + $0x4] ss:$16 sps:$4 sm:$0xff]   ;;  %v82_v6 = vld [vmem:[#allocation3] sm:$0xff] }
  0x4e   :  { %190 = vmatprep.mubr.bf16.mxu0 %v3493_v1  ;;  %231 = vmatprep.mubr.bf16.mxu1 %v3493_v1  ;;  %v3315_v3 = vld [vmem:[#allocation5] ss:$16 sps:$4 sm:$0xff]   ;;  %v3316_v4 = vld [vmem:[#allocation5 + $0x24] ss:$16 sps:$4 sm:$0xff]   ;;  %v3319_v7 = vld [vmem:[#allocation5 + $0xc] ss:$16 sps:$4 sm:$0xff]   ;;  %v83_v12 = vpack.c.bf16 %v82_v6, %v82_v6 }
  0x4f   :  { %158 = vmatprep.subr.bf16.mxu0 %v3313_v2  ;;  %v3318_v5 = vld [vmem:[#allocation5 + $0x20] ss:$16 sps:$4 sm:$0xff]   ;;  %v3321_v8 = vld [vmem:[#allocation5 + $0x8] ss:$16 sps:$4 sm:$0xff]   ;;  %199 = vmatprep.subr.bf16.mxu1 %v3319_v7  ;;  %v3322_v9 = vld [vmem:[#allocation5 + $0x2c] ss:$16 sps:$4 sm:$0xff]  }
  0x50   :  { %159 = vmatpush1.bf16.msra.mxu0 %v3315_v3  ;;  %v3324_v10 = vld [vmem:[#allocation5 + $0x28] ss:$16 sps:$4 sm:$0xff]   ;;  %v248_v11 = vld [vmem:[#allocation7] sm:$0xff]  ;;  %200 = vmatpush1.bf16.msra.mxu1 %v3321_v8  ;;  %vm154_vm0 = vcmask 261120   ;;  %vm2850_vm1 = vcmask 7168  }
  0x51   :  { %160 = vmatprep.subr.bf16.mxu0 %v3316_v4  ;;  %v252_v13 = vld [vmem:[#allocation7 + $0x20] sm:$0xff]  ;;  %v249_v14 = vld [vmem:[#allocation7 + $0x8] sm:$0xff]  ;;  %201 = vmatprep.subr.bf16.mxu1 %v3322_v9 }
  0x52   :  { %v253_v15 = vld [vmem:[#allocation7 + $0x28] sm:$0xff]  ;;  %v2869_v16 = vcombine.low %v248_v11, %v252_v13  ;;  %v2870_v17 = vcombine.high %v248_v11, %v252_v13  ;;  %v256_v18 = vld [vmem:[#allocation7 + $0x40] sm:$0xff] }
  0x53   :  { %v260_v19 = vld [vmem:[#allocation7 + $0x60] sm:$0xff]  ;;  %v2872_v20 = vcombine.high %v249_v14, %v253_v15  ;;  %v257_v22 = vld [vmem:[#allocation7 + $0x48] sm:$0xff]  ;;  %v2871_v26 = vcombine.low %v249_v14, %v253_v15 }
  0x54   :  { %161 = vmatpush1.bf16.msra.mxu0 %v3318_v5  ;;  %v2878_v21 = vcombine.high %v256_v18, %v260_v19  ;;  %v261_v23 = vld [vmem:[#allocation7 + $0x68] sm:$0xff]  ;;  %v264_v24 = vld [vmem:[#allocation7 + $0x80] sm:$0xff]  ;;  %202 = vmatpush1.bf16.msra.mxu1 %v3324_v10  ;;  %v2877_v27 = vcombine.low %v256_v18, %v260_v19 }
  0x55   :  { %1826 = vmatprep.subr.bf16.mxu0 %v2870_v17  ;;  %v268_v25 = vld [vmem:[#allocation7 + $0xa0] sm:$0xff]  ;;  %1908 = vmatprep.subr.bf16.mxu1 %v2872_v20  ;;  %v2880_v28 = vcombine.high %v257_v22, %v261_v23  ;;  %v265_v30 = vld [vmem:[#allocation7 + $0x88] sm:$0xff]  ;;  %v2879_v34 = vcombine.low %v257_v22, %v261_v23 }
  0x56   :  { %v2886_v29 = vcombine.high %v264_v24, %v268_v25  ;;  %v269_v31 = vld [vmem:[#allocation7 + $0xa8] sm:$0xff]  ;;  %v272_v32 = vld [vmem:[#allocation7 + $0xc0] sm:$0xff]  ;;  %v2885_v35 = vcombine.low %v264_v24, %v268_v25 }
  0x57   :  { %2867 = vmatmul.mubr.msk.bf16.vlgmr.msra.gmra.mrb[0].mxu0 %vm154_vm0, %v83_v12  ;;  %2868 = vmatmul.mubr.msk.bf16.vlgmr.msra.gmra.mrb[0].mxu1 %vm154_vm0, %v83_v12  ;;  %v276_v33 = vld [vmem:[#allocation7 + $0xe0] sm:$0xff]  ;;  %v2888_v36 = vcombine.high %v265_v30, %v269_v31  ;;  %v273_v38 = vld [vmem:[#allocation7 + $0xc8] sm:$0xff]  ;;  %v2887_v42 = vcombine.low %v265_v30, %v269_v31 }
  0x58   :  { %1827 = vmatpush1.bf16.msra.mxu0 %v2869_v16  ;;  %1909 = vmatpush1.bf16.msra.mxu1 %v2871_v26  ;;  %v2894_v37 = vcombine.high %v272_v32, %v276_v33  ;;  %v277_v39 = vld [vmem:[#allocation7 + $0xe8] sm:$0xff]  ;;  %v280_v40 = vld [vmem:[#allocation7 + $0x100] sm:$0xff]  ;;  %v2893_v43 = vcombine.low %v272_v32, %v276_v33 }
  0x59   :  { %1828 = vmatprep.subr.bf16.mxu0 %v2878_v21  ;;  %1910 = vmatprep.subr.bf16.mxu1 %v2880_v28  ;;  %v284_v41 = vld [vmem:[#allocation7 + $0x120] sm:$0xff]  ;;  %v2896_v44 = vcombine.high %v273_v38, %v277_v39  ;;  %v281_v46 = vld [vmem:[#allocation7 + $0x108] sm:$0xff]  ;;  %v2895_v50 = vcombine.low %v273_v38, %v277_v39 }
  0x5a   :  { %v2902_v45 = vcombine.high %v280_v40, %v284_v41  ;;  %v285_v47 = vld [vmem:[#allocation7 + $0x128] sm:$0xff]  ;;  %v288_v48 = vld [vmem:[#allocation7 + $0x140] sm:$0xff]  ;;  %v2901_v51 = vcombine.low %v280_v40, %v284_v41 }
  0x5b   :  { %v292_v49 = vld [vmem:[#allocation7 + $0x160] sm:$0xff]  ;;  %v2904_v52 = vcombine.high %v281_v46, %v285_v47  ;;  %v289_v53 = vld [vmem:[#allocation7 + $0x148] sm:$0xff]  ;;  %v2903_v58 = vcombine.low %v281_v46, %v285_v47 }
  0x5c   :  { %1829 = vmatpush1.bf16.msra.mxu0 %v2877_v27  ;;  %1911 = vmatpush1.bf16.msra.mxu1 %v2879_v34  ;;  %v293_v54 = vld [vmem:[#allocation7 + $0x168] sm:$0xff]  ;;  %v2910_v55 = vcombine.high %v288_v48, %v292_v49  ;;  %v296_v56 = vld [vmem:[#allocation7 + $0x180] sm:$0xff]  ;;  %v2909_v61 = vcombine.low %v288_v48, %v292_v49 }
  0x5d   :  { %1830 = vmatprep.subr.bf16.mxu0 %v2886_v29  ;;  %1912 = vmatprep.subr.bf16.mxu1 %v2888_v36  ;;  %v300_v57 = vld [vmem:[#allocation7 + $0x1a0] sm:$0xff]  ;;  %v297_v59 = vld [vmem:[#allocation7 + $0x188] sm:$0xff]  ;;  %v2912_v62 = vcombine.high %v289_v53, %v293_v54  ;;  %v2911_v2 = vcombine.low %v289_v53, %v293_v54 }
  0x5e   :  { %v301_v60 = vld [vmem:[#allocation7 + $0x1a8] sm:$0xff]  ;;  %v304_v63 = vld [vmem:[#allocation7 + $0x1c0] sm:$0xff]  ;;  %v2918_v1 = vcombine.high %v296_v56, %v300_v57  ;;  %v2917_v5 = vcombine.low %v296_v56, %v300_v57 }
  0x5f   :  { %v308_v0 = vld [vmem:[#allocation7 + $0x1e0] sm:$0xff]  ;;  %v305_v3 = vld [vmem:[#allocation7 + $0x1c8] sm:$0xff]  ;;  %v2920_v6 = vcombine.high %v297_v59, %v301_v60  ;;  %v2919_v10 = vcombine.low %v297_v59, %v301_v60 }
  0x60   :  { %1831 = vmatpush1.bf16.msra.mxu0 %v2885_v35  ;;  %1913 = vmatpush1.bf16.msra.mxu1 %v2887_v42  ;;  %v309_v4 = vld [vmem:[#allocation7 + $0x1e8] sm:$0xff]  ;;  %v312_v7 = vld [vmem:[#allocation7 + $0x200] sm:$0xff]  ;;  %v2926_v9 = vcombine.high %v304_v63, %v308_v0  ;;  %v2925_v13 = vcombine.low %v304_v63, %v308_v0 }
  0x61   :  { %1832 = vmatprep.subr.bf16.mxu0 %v2894_v37  ;;  %1914 = vmatprep.subr.bf16.mxu1 %v2896_v44  ;;  %v316_v8 = vld [vmem:[#allocation7 + $0x220] sm:$0xff]  ;;  %v313_v11 = vld [vmem:[#allocation7 + $0x208] sm:$0xff]  ;;  %v2928_v14 = vcombine.high %v305_v3, %v309_v4  ;;  %v2927_v18 = vcombine.low %v305_v3, %v309_v4 }
  0x62   :  { %v317_v12 = vld [vmem:[#allocation7 + $0x228] sm:$0xff]  ;;  %v320_v15 = vld [vmem:[#allocation7 + $0x240] sm:$0xff]  ;;  %v2934_v17 = vcombine.high %v312_v7, %v316_v8  ;;  %v2933_v21 = vcombine.low %v312_v7, %v316_v8 }
  0x63   :  { %v324_v16 = vld [vmem:[#allocation7 + $0x260] sm:$0xff]  ;;  %v321_v19 = vld [vmem:[#allocation7 + $0x248] sm:$0xff]  ;;  %v2936_v22 = vcombine.high %v313_v11, %v317_v12  ;;  %v2935_v26 = vcombine.low %v313_v11, %v317_v12 }
  0x64   :  { %1833 = vmatpush1.bf16.msra.mxu0 %v2893_v43  ;;  %1915 = vmatpush1.bf16.msra.mxu1 %v2895_v50  ;;  %v325_v20 = vld [vmem:[#allocation7 + $0x268] sm:$0xff]  ;;  %v328_v23 = vld [vmem:[#allocation7 + $0x280] sm:$0xff]  ;;  %v2942_v25 = vcombine.high %v320_v15, %v324_v16  ;;  %v2941_v29 = vcombine.low %v320_v15, %v324_v16 }
  0x65   :  { %1834 = vmatprep.subr.bf16.mxu0 %v2902_v45  ;;  %1916 = vmatprep.subr.bf16.mxu1 %v2904_v52  ;;  %v332_v24 = vld [vmem:[#allocation7 + $0x2a0] sm:$0xff]  ;;  %v329_v27 = vld [vmem:[#allocation7 + $0x288] sm:$0xff]  ;;  %v2944_v30 = vcombine.high %v321_v19, %v325_v20  ;;  %v2943_v34 = vcombine.low %v321_v19, %v325_v20  ;;  %v94_v20 = vlaneseq }
  0x66   :  { %v333_v28 = vld [vmem:[#allocation7 + $0x2a8] sm:$0xff]  ;;  %v336_v31 = vld [vmem:[#allocation7 + $0x2c0] sm:$0xff]  ;;  %v2950_v33 = vcombine.high %v328_v23, %v332_v24  ;;  %v2949_v37 = vcombine.low %v328_v23, %v332_v24  ;;  %v3593_v23 = vld [vmem:[%s3667_s2] sm:$0xf] }
  0x67   :  { %v340_v32 = vld [vmem:[#allocation7 + $0x2e0] sm:$0xff]  ;;  %v337_v35 = vld [vmem:[#allocation7 + $0x2c8] sm:$0xff]  ;;  %v2952_v38 = vcombine.high %v329_v27, %v333_v28  ;;  %v2951_v42 = vcombine.low %v329_v27, %v333_v28 }
  0x68   :  { %1835 = vmatpush1.bf16.msra.mxu0 %v2901_v51  ;;  %1917 = vmatpush1.bf16.msra.mxu1 %v2903_v58  ;;  %v341_v36 = vld [vmem:[#allocation7 + $0x2e8] sm:$0xff]  ;;  %v344_v39 = vld [vmem:[#allocation7 + $0x300] sm:$0xff]  ;;  %v2958_v41 = vcombine.high %v336_v31, %v340_v32  ;;  %v2957_v45 = vcombine.low %v336_v31, %v340_v32 }
  0x69   :  { %1836 = vmatprep.subr.bf16.mxu0 %v2910_v55  ;;  %1918 = vmatprep.subr.bf16.mxu1 %v2912_v62  ;;  %v348_v40 = vld [vmem:[#allocation7 + $0x320] sm:$0xff]  ;;  %v345_v43 = vld [vmem:[#allocation7 + $0x308] sm:$0xff]  ;;  %v2960_v46 = vcombine.high %v337_v35, %v341_v36  ;;  %v2959_v50 = vcombine.low %v337_v35, %v341_v36 }
  0x6a   :  { %v349_v44 = vld [vmem:[#allocation7 + $0x328] sm:$0xff]  ;;  %v352_v47 = vld [vmem:[#allocation7 + $0x340] sm:$0xff]  ;;  %v2966_v49 = vcombine.high %v344_v39, %v348_v40  ;;  %v2965_v53 = vcombine.low %v344_v39, %v348_v40 }
  0x6b   :  { %v356_v48 = vld [vmem:[#allocation7 + $0x360] sm:$0xff]  ;;  %v353_v51 = vld [vmem:[#allocation7 + $0x348] sm:$0xff]  ;;  %v2968_v54 = vcombine.high %v345_v43, %v349_v44  ;;  %v2967_v56 = vcombine.low %v345_v43, %v349_v44 }
  0x6c   :  { %1837 = vmatpush1.bf16.msra.mxu0 %v2909_v61  ;;  %1919 = vmatpush1.bf16.msra.mxu1 %v2911_v2  ;;  %v357_v52 = vld [vmem:[#allocation7 + $0x368] sm:$0xff]  ;;  %v2974_v55 = vcombine.high %v352_v47, %v356_v48  ;;  %v2973_v57 = vcombine.low %v352_v47, %v356_v48  ;;  %v360_v60 = vld [vmem:[#allocation7 + $0x380] sm:$0xff] }
  0x6d   :  { %1838 = vmatprep.subr.bf16.mxu0 %v2918_v1  ;;  %1920 = vmatprep.subr.bf16.mxu1 %v2920_v6  ;;  %v2976_v58 = vcombine.high %v353_v51, %v357_v52  ;;  %v2975_v59 = vcombine.low %v353_v51, %v357_v52  ;;  %v364_v61 = vld [vmem:[#allocation7 + $0x3a0] sm:$0xff]  ;;  %v361_v62 = vld [vmem:[#allocation7 + $0x388] sm:$0xff] }
  0x6e   :  { %v2982_v63 = vcombine.high %v360_v60, %v364_v61  ;;  %v365_v0 = vld [vmem:[#allocation7 + $0x3a8] sm:$0xff]  ;;  %v2981_v1 = vcombine.low %v360_v60, %v364_v61  ;;  %v368_v4 = vld [vmem:[#allocation7 + $0x3c0] sm:$0xff] }
  0x6f   :  { %v2983_v2 = vcombine.low %v361_v62, %v365_v0  ;;  %v2984_v3 = vcombine.high %v361_v62, %v365_v0  ;;  %v369_v6 = vld [vmem:[#allocation7 + $0x3c8] sm:$0xff]  ;;  %v376_v12 = vld [vmem:[#allocation7 + $0x400] sm:$0xff] }
  0x70   :  { %1839 = vmatpush1.bf16.msra.mxu0 %v2917_v5  ;;  %1921 = vmatpush1.bf16.msra.mxu1 %v2919_v10  ;;  %v372_v5 = vld [vmem:[#allocation7 + $0x3e0] sm:$0xff]  ;;  %v373_v8 = vld [vmem:[#allocation7 + $0x3e8] sm:$0xff] }
  0x71   :  { %1840 = vmatprep.subr.bf16.mxu0 %v2926_v9  ;;  %1922 = vmatprep.subr.bf16.mxu1 %v2928_v14  ;;  %v2990_v7 = vcombine.high %v368_v4, %v372_v5  ;;  %v2989_v9 = vcombine.low %v368_v4, %v372_v5  ;;  %v2991_v10 = vcombine.low %v369_v6, %v373_v8  ;;  %v377_v14 = vld [vmem:[#allocation7 + $0x408] sm:$0xff]  ;;  %v384_v36 = vld [vmem:[#allocation7 + $0x440] sm:$0xff] }
  0x72   :  { %v2992_v11 = vcombine.high %v369_v6, %v373_v8  ;;  %v381_v16 = vld [vmem:[#allocation7 + $0x428] sm:$0xff]  ;;  %v388_v39 = vld [vmem:[#allocation7 + $0x460] sm:$0xff] }
  0x73   :  { %v3000_v19 = vcombine.high %v377_v14, %v381_v16  ;;  %v385_v40 = vld [vmem:[#allocation7 + $0x448] sm:$0xff]  ;;  %v3006_v48 = vcombine.high %v384_v36, %v388_v39  ;;  %v396_v52 = vld [vmem:[#allocation7 + $0x4a0] sm:$0xff] }
  0x74   :  { %1841 = vmatpush1.bf16.msra.mxu0 %v2925_v13  ;;  %1923 = vmatpush1.bf16.msra.mxu1 %v2927_v18  ;;  %v380_v13 = vld [vmem:[#allocation7 + $0x420] sm:$0xff]  ;;  %v2999_v18 = vcombine.low %v377_v14, %v381_v16  ;;  %v401_v62 = vld [vmem:[#allocation7 + $0x4c8] sm:$0xff] }
  0x75   :  { %1842 = vmatprep.subr.bf16.mxu0 %v2934_v17  ;;  %1924 = vmatprep.subr.bf16.mxu1 %v2936_v22  ;;  %v2998_v15 = vcombine.high %v376_v12, %v380_v13  ;;  %v2997_v17 = vcombine.low %v376_v12, %v380_v13  ;;  %v400_v60 = vld [vmem:[#allocation7 + $0x4c0] sm:$0xff]  ;;  %v409_v6 = vld [vmem:[#allocation7 + $0x508] sm:$0xff] }
  0x76   :  { %v404_v61 = vld [vmem:[#allocation7 + $0x4e0] sm:$0xff]  ;;  %v417_v14 = vld [vmem:[#allocation7 + $0x548] sm:$0xff] }
  0x77   :  { %v408_v4 = vld [vmem:[#allocation7 + $0x500] sm:$0xff]  ;;  %v3021_v8 = vcombine.low %v400_v60, %v404_v61 }
  0x78   :  { %1843 = vmatpush1.bf16.msra.mxu0 %v2933_v21  ;;  %1925 = vmatpush1.bf16.msra.mxu1 %v2935_v26  ;;  %v3587_v21 = vshrl.u32 %v94_v20, 7  ;;  %v412_v5 = vld [vmem:[#allocation7 + $0x520] sm:$0xff] }
  0x79   :  { %1844 = vmatprep.subr.bf16.mxu0 %v2942_v25  ;;  %1926 = vmatprep.subr.bf16.mxu1 %v2944_v30  ;;  %v416_v12 = vld [vmem:[#allocation7 + $0x540] sm:$0xff]  ;;  %v3029_v16 = vcombine.low %v408_v4, %v412_v5 }
  0x7a   :  { %v96_v22 = vsub.s32 0, %v3587_v21  ;;  %v100_v24 = vsub.s32 1, %v3587_v21  ;;  %v108_v26 = vsub.s32 3, %v3587_v21  ;;  %v420_v13 = vld [vmem:[#allocation7 + $0x560] sm:$0xff] }
  0x7b   :  { %v424_v20 = vld [vmem:[#allocation7 + $0x580] sm:$0xff] }
  0x7c   :  { %1845 = vmatpush1.bf16.msra.mxu0 %v2941_v29  ;;  %1927 = vmatpush1.bf16.msra.mxu1 %v2943_v34  ;;  %v97_v25 = vrot.slane %v3593_v23, %v96_v22  ;;  %v101_v27 = vrot.slane %v3593_v23, %v100_v24  ;;  %v109_v31 = vrot.slane %v3593_v23, %v108_v26 }
  0x7d   :  { %1846 = vmatprep.subr.bf16.mxu0 %v2950_v33  ;;  %1928 = vmatprep.subr.bf16.mxu1 %v2952_v38 }
  0x80   :  { %1847 = vmatpush1.bf16.msra.mxu0 %v2949_v37  ;;  %1929 = vmatpush1.bf16.msra.mxu1 %v2951_v42 }
  0x81   :  { %1848 = vmatprep.subr.bf16.mxu0 %v2958_v41  ;;  %1930 = vmatprep.subr.bf16.mxu1 %v2960_v46  ;;  %v389_v41 = vld [vmem:[#allocation7 + $0x468] sm:$0xff] }
  0x84   :  { %1849 = vmatpush1.bf16.msra.mxu0 %v2957_v45  ;;  %1931 = vmatpush1.bf16.msra.mxu1 %v2959_v50  ;;  %v392_v50 = vld [vmem:[#allocation7 + $0x480] sm:$0xff] }
  0x85   :  { %1850 = vmatprep.subr.bf16.mxu0 %v2966_v49  ;;  %1932 = vmatprep.subr.bf16.mxu1 %v2968_v54  ;;  %v3008_v49 = vcombine.high %v385_v40, %v389_v41  ;;  %v397_v54 = vld [vmem:[#allocation7 + $0x4a8] sm:$0xff]  ;;  %v3013_v0 = vcombine.low %v392_v50, %v396_v52 }
  0x88   :  { %1851 = vmatpush1.bf16.msra.mxu0 %v2965_v53  ;;  %1933 = vmatpush1.bf16.msra.mxu1 %v2967_v56  ;;  %v393_v53 = vld [vmem:[#allocation7 + $0x488] sm:$0xff]  ;;  %v3005_v56 = vcombine.low %v384_v36, %v388_v39 }
  0x89   :  { %1852 = vmatprep.subr.bf16.mxu0 %v2974_v55  ;;  %1934 = vmatprep.subr.bf16.mxu1 %v2976_v58  ;;  %v3014_v58 = vcombine.high %v392_v50, %v396_v52  ;;  %v437_v36 = vld [vmem:[#allocation7 + $0x5e8] sm:$0xff]  ;;  %v448_v52 = vld [vmem:[#allocation7 + $0x640] sm:$0xff] }
  0x8c   :  { %1853 = vmatpush1.bf16.msra.mxu0 %v2973_v57  ;;  %1935 = vmatpush1.bf16.msra.mxu1 %v2975_v59  ;;  %v3007_v57 = vcombine.low %v385_v40, %v389_v41  ;;  %v3016_v59 = vcombine.high %v393_v53, %v397_v54 }
  0x8d   :  { %1854 = vmatprep.subr.bf16.mxu0 %v2982_v63  ;;  %1936 = vmatprep.subr.bf16.mxu1 %v2984_v3  ;;  %v405_v63 = vld [vmem:[#allocation7 + $0x4e8] sm:$0xff] }
  0x8e   :  { %v3024_v3 = vcombine.high %v401_v62, %v405_v63 }
  0x90   :  { %1855 = vmatpush1.bf16.msra.mxu0 %v2981_v1  ;;  %1937 = vmatpush1.bf16.msra.mxu1 %v2983_v2  ;;  %v3015_v1 = vcombine.low %v393_v53, %v397_v54  ;;  %v3022_v2 = vcombine.high %v400_v60, %v404_v61  ;;  %v452_v53 = vld [vmem:[#allocation7 + $0x660] sm:$0xff]  ;;  %v449_v54 = vld [vmem:[#allocation7 + $0x648] sm:$0xff] }
  0x91   :  { %1856 = vmatprep.subr.bf16.mxu0 %v2990_v7  ;;  %1938 = vmatprep.subr.bf16.mxu1 %v2992_v11  ;;  %v413_v7 = vld [vmem:[#allocation7 + $0x528] sm:$0xff]  ;;  %v456_v61 = vld [vmem:[#allocation7 + $0x680] sm:$0xff] }
  0x92   :  { %v3032_v11 = vcombine.high %v409_v6, %v413_v7 }
  0x94   :  { %1857 = vmatpush1.bf16.msra.mxu0 %v2989_v9  ;;  %1939 = vmatpush1.bf16.msra.mxu1 %v2991_v10  ;;  %v3023_v9 = vcombine.low %v401_v62, %v405_v63  ;;  %v3030_v10 = vcombine.high %v408_v4, %v412_v5  ;;  %v460_v62 = vld [vmem:[#allocation7 + $0x6a0] sm:$0xff]  ;;  %v457_v63 = vld [vmem:[#allocation7 + $0x688] sm:$0xff] }
  0x95   :  { %1867 = vmatprep.subr.bf16.mxu0 %v2998_v15  ;;  %1949 = vmatprep.subr.bf16.mxu1 %v3000_v19  ;;  %v421_v15 = vld [vmem:[#allocation7 + $0x568] sm:$0xff]  ;;  %v464_v5 = vld [vmem:[#allocation7 + $0x6c0] sm:$0xff] }
  0x96   :  { %v3040_v19 = vcombine.high %v417_v14, %v421_v15 }
 0x12a   :  { %v192_v28 = vpop.f32.mrb[0].mxu0  ;;  %v3606_v37 = vpop.f32.mrb[0].mxu1 }
 0x12b   :  { %v193_v29 = vadd.f32 %v192_v28, %v97_v25  ;;  %v194_v30 = vpop.f32.mrb[1].mxu0  ;;  %v235_v42 = vpop.f32.mrb[1].mxu1  ;;  %v428_v25 = vld [vmem:[#allocation7 + $0x5a0] sm:$0xff]  ;;  %v429_v28 = vld [vmem:[#allocation7 + $0x5a8] sm:$0xff] }
 0x12c   :  { %v195_v32 = vadd.f32 %v194_v30, %v101_v27  ;;  %v196_v33 = vpop.f32.mrb[2].mxu0  ;;  %v236_v43 = vadd.f32 %v235_v42, %v109_v31  ;;  %v237_v44 = vpop.f32.mrb[2].mxu1  ;;  %v425_v27 = vld [vmem:[#allocation7 + $0x588] sm:$0xff]  ;;  %v3039_v30 = vcombine.low %v417_v14, %v421_v15  ;;  %v3046_v31 = vcombine.high %v424_v20, %v428_v25  ;;  %v440_v42 = vld [vmem:[#allocation7 + $0x600] sm:$0xff] }
 0x12d   :  { %v240_v34 = vmax.f32 %v193_v29, 0.0  ;;  %v197_v35 = vpop.f32.mrb[3].mxu0  ;;  %v238_v46 = vpop.f32.mrb[3].mxu1  ;;  %v3037_v29 = vcombine.low %v416_v12, %v420_v13  ;;  %v432_v33 = vld [vmem:[#allocation7 + $0x5c0] sm:$0xff]  ;;  %v3047_v39 = vcombine.low %v425_v27, %v429_v28  ;;  %v441_v44 = vld [vmem:[#allocation7 + $0x608] sm:$0xff] }
 0x12e   :  { %v241_v38 = vmax.f32 %v195_v32, 0.0  ;;  %v243_v51 = vmax.f32 %v236_v43, 0.0  ;;  %v3048_v32 = vcombine.high %v425_v27, %v429_v28  ;;  %v433_v35 = vld [vmem:[#allocation7 + $0x5c8] sm:$0xff]  ;;  %v444_v43 = vld [vmem:[#allocation7 + $0x620] sm:$0xff] }
 0x12f   :  { %v3610_v47 = vpack.c.bf16 %v240_v34, %v240_v34  ;;  %v436_v34 = vld [vmem:[#allocation7 + $0x5e0] sm:$0xff]  ;;  %v3056_v41 = vcombine.high %v433_v35, %v437_v36  ;;  %v445_v46 = vld [vmem:[#allocation7 + $0x628] sm:$0xff]  ;;  %v3062_v50 = vcombine.high %v440_v42, %v444_v43 }
 0x130   :  { %v3608_v45 = vpack.c.bf16 %v241_v38, %v241_v38  ;;  %v3616_v55 = vpack.c.bf16 %v243_v51, %v243_v51  ;;  %v3045_v38 = vcombine.low %v424_v20, %v428_v25  ;;  %v3054_v40 = vcombine.high %v432_v33, %v436_v34  ;;  %v476_v14 = vld [vmem:[#allocation7 + $0x720] sm:$0xff]  ;;  %v473_v15 = vld [vmem:[#allocation7 + $0x708] sm:$0xff] }
 0x131   :  { %v3064_v51 = vcombine.high %v441_v44, %v445_v46  ;;  %v480_v25 = vld [vmem:[#allocation7 + $0x740] sm:$0xff]  ;;  %v481_v28 = vld [vmem:[#allocation7 + $0x748] sm:$0xff] }
 0x132   :  { %1858 = vmatprep.mubr.bf16.mxu0 %v3608_v45  ;;  %1940 = vmatprep.mubr.bf16.mxu1 %v3608_v45  ;;  %v484_v27 = vld [vmem:[#allocation7 + $0x760] sm:$0xff] }
 0x133   :  { %1859 = vmatmul.mubr.bf16.vlgmr.msra.gmra.mrb[4].mxu0 %v3610_v47  ;;  %1941 = vmatmul.mubr.bf16.vlgmr.msra.gmra.mrb[4].mxu1 %v3610_v47 }
 0x134   :  { %1868 = vmatpush1.bf16.msra.mxu0 %v2997_v17  ;;  %1950 = vmatpush1.bf16.msra.mxu1 %v2999_v18  ;;  %v3031_v17 = vcombine.low %v409_v6, %v413_v7  ;;  %v3038_v18 = vcombine.high %v416_v12, %v420_v13  ;;  %v468_v6 = vld [vmem:[#allocation7 + $0x6e0] sm:$0xff]  ;;  %v465_v7 = vld [vmem:[#allocation7 + $0x6c8] sm:$0xff] }
 0x135   :  { %1869 = vmatprep.subr.bf16.mxu0 %v3006_v48  ;;  %1951 = vmatprep.subr.bf16.mxu1 %v3008_v49  ;;  %v3053_v48 = vcombine.low %v432_v33, %v436_v34  ;;  %v3055_v49 = vcombine.low %v433_v35, %v437_v36  ;;  %v472_v13 = vld [vmem:[#allocation7 + $0x700] sm:$0xff]  ;;  %v3102_v33 = vcombine.high %v480_v25, %v484_v27 }
 0x136   :  { %1899 = vmatprep.mubr.bf16.mxu0 %v3616_v55  ;;  %1981 = vmatprep.mubr.bf16.mxu1 %v3616_v55  ;;  %v488_v35 = vld [vmem:[#allocation7 + $0x780] sm:$0xff] }
 0x137   :  { %v492_v36 = vld [vmem:[#allocation7 + $0x7a0] sm:$0xff] }
 0x138   :  { %1870 = vmatpush1.bf16.msra.mxu0 %v3005_v56  ;;  %1952 = vmatpush1.bf16.msra.mxu1 %v3007_v57  ;;  %v453_v56 = vld [vmem:[#allocation7 + $0x668] sm:$0xff]  ;;  %v3061_v57 = vcombine.low %v440_v42, %v444_v43  ;;  %v3110_v43 = vcombine.high %v488_v35, %v492_v36 }
 0x139   :  { %1871 = vmatprep.subr.bf16.mxu0 %v3014_v58  ;;  %1953 = vmatprep.subr.bf16.mxu1 %v3016_v59  ;;  %v3063_v58 = vcombine.low %v441_v44, %v445_v46  ;;  %v3070_v59 = vcombine.high %v448_v52, %v452_v53  ;;  %v3072_v60 = vcombine.high %v449_v54, %v453_v56  ;;  %v496_v46 = vld [vmem:[#allocation7 + $0x7c0] sm:$0xff] }
 0x13c   :  { %1872 = vmatpush1.bf16.msra.mxu0 %v3013_v0  ;;  %1954 = vmatpush1.bf16.msra.mxu1 %v3015_v1  ;;  %v461_v0 = vld [vmem:[#allocation7 + $0x6a8] sm:$0xff]  ;;  %v3069_v1 = vcombine.low %v448_v52, %v452_v53  ;;  %v3109_v52 = vcombine.low %v488_v35, %v492_v36 }
 0x13d   :  { %1873 = vmatprep.subr.bf16.mxu0 %v3022_v2  ;;  %1955 = vmatprep.subr.bf16.mxu1 %v3024_v3  ;;  %v3071_v2 = vcombine.low %v449_v54, %v453_v56  ;;  %v3078_v3 = vcombine.high %v456_v61, %v460_v62  ;;  %v3080_v4 = vcombine.high %v457_v63, %v461_v0  ;;  %v250_v56 = vld [vmem:[#allocation7 + $0x10] sm:$0xff] }
 0x140   :  { %1874 = vmatpush1.bf16.msra.mxu0 %v3021_v8  ;;  %1956 = vmatpush1.bf16.msra.mxu1 %v3023_v9  ;;  %v469_v8 = vld [vmem:[#allocation7 + $0x6e8] sm:$0xff]  ;;  %v3077_v9 = vcombine.low %v456_v61, %v460_v62 }
 0x141   :  { %1875 = vmatprep.subr.bf16.mxu0 %v3030_v10  ;;  %1957 = vmatprep.subr.bf16.mxu1 %v3032_v11  ;;  %v3079_v10 = vcombine.low %v457_v63, %v461_v0  ;;  %v3086_v11 = vcombine.high %v464_v5, %v468_v6  ;;  %v3088_v12 = vcombine.high %v465_v7, %v469_v8  ;;  %v258_v0 = vld [vmem:[#allocation7 + $0x50] sm:$0xff] }
 0x144   :  { %1876 = vmatpush1.bf16.msra.mxu0 %v3029_v16  ;;  %1958 = vmatpush1.bf16.msra.mxu1 %v3031_v17  ;;  %v477_v16 = vld [vmem:[#allocation7 + $0x728] sm:$0xff]  ;;  %v3085_v17 = vcombine.low %v464_v5, %v468_v6 }
 0x145   :  { %1877 = vmatprep.subr.bf16.mxu0 %v3038_v18  ;;  %1959 = vmatprep.subr.bf16.mxu1 %v3040_v19  ;;  %v3087_v18 = vcombine.low %v465_v7, %v469_v8  ;;  %v3094_v19 = vcombine.high %v472_v13, %v476_v14  ;;  %v3096_v20 = vcombine.high %v473_v15, %v477_v16 }
 0x148   :  { %1878 = vmatpush1.bf16.msra.mxu0 %v3037_v29  ;;  %1960 = vmatpush1.bf16.msra.mxu1 %v3039_v30  ;;  %v485_v29 = vld [vmem:[#allocation7 + $0x768] sm:$0xff]  ;;  %v104_v30 = vsub.s32 2, %v3587_v21 }
 0x149   :  { %1879 = vmatprep.subr.bf16.mxu0 %v3046_v31  ;;  %1961 = vmatprep.subr.bf16.mxu1 %v3048_v32  ;;  %v3093_v31 = vcombine.low %v472_v13, %v476_v14  ;;  %v3095_v32 = vcombine.low %v473_v15, %v477_v16  ;;  %v3104_v34 = vcombine.high %v481_v28, %v485_v29 }
 0x14a   :  { %v3103_v42 = vcombine.low %v481_v28, %v485_v29 }
 0x14c   :  { %1880 = vmatpush1.bf16.msra.mxu0 %v3045_v38  ;;  %1962 = vmatpush1.bf16.msra.mxu1 %v3047_v39  ;;  %v489_v38 = vld [vmem:[#allocation7 + $0x788] sm:$0xff] }
 0x14d   :  { %1881 = vmatprep.subr.bf16.mxu0 %v3054_v40  ;;  %1963 = vmatprep.subr.bf16.mxu1 %v3056_v41  ;;  %v493_v39 = vld [vmem:[#allocation7 + $0x7a8] sm:$0xff]  ;;  %v105_v40 = vrot.slane %v3593_v23, %v104_v30  ;;  %v3101_v41 = vcombine.low %v480_v25, %v484_v27 }
 0x14e   :  { %v3112_v44 = vcombine.high %v489_v38, %v493_v39  ;;  %v3111_v53 = vcombine.low %v489_v38, %v493_v39  ;;  %v290_v39 = vld [vmem:[#allocation7 + $0x150] sm:$0xff] }
 0x150   :  { %1882 = vmatpush1.bf16.msra.mxu0 %v3053_v48  ;;  %1964 = vmatpush1.bf16.msra.mxu1 %v3055_v49  ;;  %v500_v48 = vld [vmem:[#allocation7 + $0x7e0] sm:$0xff]  ;;  %v497_v49 = vld [vmem:[#allocation7 + $0x7c8] sm:$0xff] }
 0x151   :  { %1883 = vmatprep.subr.bf16.mxu0 %v3062_v50  ;;  %1965 = vmatprep.subr.bf16.mxu1 %v3064_v51  ;;  %v501_v50 = vld [vmem:[#allocation7 + $0x7e8] sm:$0xff]  ;;  %v234_v51 = vadd.f32 %v3606_v37, %v105_v40  ;;  %v3118_v23 = vcombine.high %v496_v46, %v500_v48  ;;  %v3117_v61 = vcombine.low %v496_v46, %v500_v48  ;;  %v294_v40 = vld [vmem:[#allocation7 + $0x170] sm:$0xff] }
 0x152   :  { %v3120_v54 = vcombine.high %v497_v49, %v501_v50  ;;  %v3119_v62 = vcombine.low %v497_v49, %v501_v50  ;;  %v2914_v46 = vcombine.high %v290_v39, %v294_v40  ;;  %v298_v49 = vld [vmem:[#allocation7 + $0x190] sm:$0xff] }
 0x153   :  { %v302_v50 = vld [vmem:[#allocation7 + $0x1b0] sm:$0xff] }
 0x154   :  { %1884 = vmatpush1.bf16.msra.mxu0 %v3061_v57  ;;  %1966 = vmatpush1.bf16.msra.mxu1 %v3063_v58  ;;  %v254_v57 = vld [vmem:[#allocation7 + $0x30] sm:$0xff]  ;;  %v251_v58 = vld [vmem:[#allocation7 + $0x18] sm:$0xff] }
 0x155   :  { %1885 = vmatprep.subr.bf16.mxu0 %v3070_v59  ;;  %1967 = vmatprep.subr.bf16.mxu1 %v3072_v60  ;;  %v255_v59 = vld [vmem:[#allocation7 + $0x38] sm:$0xff]  ;;  %v242_v60 = vmax.f32 %v234_v51, 0.0  ;;  %v2874_v37 = vcombine.high %v250_v56, %v254_v57  ;;  %v2873_v5 = vcombine.low %v250_v56, %v254_v57  ;;  %v306_v57 = vld [vmem:[#allocation7 + $0x1d0] sm:$0xff] }
 0x156   :  { %v2876_v63 = vcombine.high %v251_v58, %v255_v59  ;;  %v2875_v6 = vcombine.low %v251_v58, %v255_v59  ;;  %v299_v51 = vld [vmem:[#allocation7 + $0x198] sm:$0xff]  ;;  %v310_v58 = vld [vmem:[#allocation7 + $0x1f0] sm:$0xff] }
 0x157   :  { %v307_v59 = vld [vmem:[#allocation7 + $0x1d8] sm:$0xff] }
 0x158   :  { %1886 = vmatpush1.bf16.msra.mxu0 %v3069_v1  ;;  %1968 = vmatpush1.bf16.msra.mxu1 %v3071_v2  ;;  %v3625_v1 = vpack.c.bf16 %v242_v60, %v242_v60  ;;  %v262_v2 = vld [vmem:[#allocation7 + $0x70] sm:$0xff]  ;;  %v311_v60 = vld [vmem:[#allocation7 + $0x1f8] sm:$0xff] }
 0x159   :  { %1887 = vmatprep.subr.bf16.mxu0 %v3078_v3  ;;  %1969 = vmatprep.subr.bf16.mxu1 %v3080_v4  ;;  %v259_v3 = vld [vmem:[#allocation7 + $0x58] sm:$0xff]  ;;  %v2882_v7 = vcombine.high %v258_v0, %v262_v2  ;;  %v2881_v13 = vcombine.low %v258_v0, %v262_v2  ;;  %v314_v0 = vld [vmem:[#allocation7 + $0x210] sm:$0xff] }
 0x15a   :  { %v263_v4 = vld [vmem:[#allocation7 + $0x78] sm:$0xff]  ;;  %v318_v2 = vld [vmem:[#allocation7 + $0x230] sm:$0xff] }
 0x15b   :  { %v2884_v8 = vcombine.high %v259_v3, %v263_v4  ;;  %v2883_v14 = vcombine.low %v259_v3, %v263_v4  ;;  %v315_v3 = vld [vmem:[#allocation7 + $0x218] sm:$0xff] }
 0x15c   :  { %1888 = vmatpush1.bf16.msra.mxu0 %v3077_v9  ;;  %1970 = vmatpush1.bf16.msra.mxu1 %v3079_v10  ;;  %v266_v9 = vld [vmem:[#allocation7 + $0x90] sm:$0xff]  ;;  %v319_v4 = vld [vmem:[#allocation7 + $0x238] sm:$0xff] }
 0x15d   :  { %1889 = vmatprep.subr.bf16.mxu0 %v3086_v11  ;;  %1971 = vmatprep.subr.bf16.mxu1 %v3088_v12  ;;  %v270_v10 = vld [vmem:[#allocation7 + $0xb0] sm:$0xff]  ;;  %v267_v11 = vld [vmem:[#allocation7 + $0x98] sm:$0xff] }
 0x15e   :  { %v271_v12 = vld [vmem:[#allocation7 + $0xb8] sm:$0xff]  ;;  %v2890_v15 = vcombine.high %v266_v9, %v270_v10  ;;  %v2889_v25 = vcombine.low %v266_v9, %v270_v10  ;;  %v322_v9 = vld [vmem:[#allocation7 + $0x250] sm:$0xff] }
 0x15f   :  { %v2892_v16 = vcombine.high %v267_v11, %v271_v12  ;;  %v2891_v27 = vcombine.low %v267_v11, %v271_v12  ;;  %v326_v10 = vld [vmem:[#allocation7 + $0x270] sm:$0xff]  ;;  %v323_v11 = vld [vmem:[#allocation7 + $0x258] sm:$0xff] }
 0x160   :  { %1890 = vmatpush1.bf16.msra.mxu0 %v3085_v17  ;;  %1972 = vmatpush1.bf16.msra.mxu1 %v3087_v18  ;;  %v274_v17 = vld [vmem:[#allocation7 + $0xd0] sm:$0xff]  ;;  %v327_v12 = vld [vmem:[#allocation7 + $0x278] sm:$0xff] }
 0x161   :  { %1891 = vmatprep.subr.bf16.mxu0 %v3094_v19  ;;  %1973 = vmatprep.subr.bf16.mxu1 %v3096_v20  ;;  %v278_v18 = vld [vmem:[#allocation7 + $0xf0] sm:$0xff]  ;;  %v275_v19 = vld [vmem:[#allocation7 + $0xd8] sm:$0xff] }
 0x162   :  { %v279_v20 = vld [vmem:[#allocation7 + $0xf8] sm:$0xff]  ;;  %v2898_v28 = vcombine.high %v274_v17, %v278_v18 }
 0x163   :  { %v2900_v29 = vcombine.high %v275_v19, %v279_v20  ;;  %v2899_v35 = vcombine.low %v275_v19, %v279_v20  ;;  %v331_v19 = vld [vmem:[#allocation7 + $0x298] sm:$0xff] }
 0x164   :  { %1892 = vmatpush1.bf16.msra.mxu0 %v3093_v31  ;;  %1974 = vmatpush1.bf16.msra.mxu1 %v3095_v32  ;;  %v282_v31 = vld [vmem:[#allocation7 + $0x110] sm:$0xff]  ;;  %v335_v20 = vld [vmem:[#allocation7 + $0x2b8] sm:$0xff] }
 0x165   :  { %1893 = vmatprep.subr.bf16.mxu0 %v3102_v33  ;;  %1975 = vmatprep.subr.bf16.mxu1 %v3104_v34  ;;  %v286_v32 = vld [vmem:[#allocation7 + $0x130] sm:$0xff]  ;;  %v287_v33 = vld [vmem:[#allocation7 + $0x138] sm:$0xff]  ;;  %v2897_v34 = vcombine.low %v274_v17, %v278_v18 }
 0x166   :  { %v2906_v36 = vcombine.high %v282_v31, %v286_v32  ;;  %v330_v17 = vld [vmem:[#allocation7 + $0x290] sm:$0xff] }
 0x167   :  { %v334_v18 = vld [vmem:[#allocation7 + $0x2b0] sm:$0xff] }
 0x168   :  { %1894 = vmatpush1.bf16.msra.mxu0 %v3101_v41  ;;  %1976 = vmatpush1.bf16.msra.mxu1 %v3103_v42  ;;  %v291_v41 = vld [vmem:[#allocation7 + $0x158] sm:$0xff] }
 0x169   :  { %1895 = vmatprep.subr.bf16.mxu0 %v3110_v43  ;;  %1977 = vmatprep.subr.bf16.mxu1 %v3112_v44  ;;  %v295_v42 = vld [vmem:[#allocation7 + $0x178] sm:$0xff]  ;;  %v2905_v43 = vcombine.low %v282_v31, %v286_v32  ;;  %v338_v31 = vld [vmem:[#allocation7 + $0x2d0] sm:$0xff] }
 0x16a   :  { %v2916_v48 = vcombine.high %v291_v41, %v295_v42  ;;  %v342_v32 = vld [vmem:[#allocation7 + $0x2f0] sm:$0xff] }
 0x16c   :  { %1896 = vmatpush1.bf16.msra.mxu0 %v3109_v52  ;;  %1978 = vmatpush1.bf16.msra.mxu1 %v3111_v53  ;;  %v303_v52 = vld [vmem:[#allocation7 + $0x1b8] sm:$0xff]  ;;  %v2913_v53 = vcombine.low %v290_v39, %v294_v40  ;;  %v346_v39 = vld [vmem:[#allocation7 + $0x310] sm:$0xff] }
 0x16d   :  { %1897 = vmatprep.subr.bf16.mxu0 %v3118_v23  ;;  %1979 = vmatprep.subr.bf16.mxu1 %v3120_v54  ;;  %v2915_v23 = vcombine.low %v291_v41, %v295_v42  ;;  %v2922_v54 = vcombine.high %v298_v49, %v302_v50  ;;  %v2924_v56 = vcombine.high %v299_v51, %v303_v52  ;;  %v350_v40 = vld [vmem:[#allocation7 + $0x330] sm:$0xff]  ;;  %v347_v41 = vld [vmem:[#allocation7 + $0x318] sm:$0xff] }
 0x16e   :  { %v351_v42 = vld [vmem:[#allocation7 + $0x338] sm:$0xff] }
 0x170   :  { %1898 = vmatpush1.bf16.msra.mxu0 %v3117_v61  ;;  %1980 = vmatpush1.bf16.msra.mxu1 %v3119_v62  ;;  %v2921_v61 = vcombine.low %v298_v49, %v302_v50  ;;  %v2923_v62 = vcombine.low %v299_v51, %v303_v52  ;;  %v354_v49 = vld [vmem:[#allocation7 + $0x350] sm:$0xff]  ;;  %v355_v51 = vld [vmem:[#allocation7 + $0x358] sm:$0xff] }
 0x171   :  { %1990 = vmatprep.subr.bf16.mxu0 %v2874_v37  ;;  %2072 = vmatprep.subr.bf16.mxu1 %v2876_v63  ;;  %v2930_v37 = vcombine.high %v306_v57, %v310_v58  ;;  %v2932_v63 = vcombine.high %v307_v59, %v311_v60  ;;  %v358_v50 = vld [vmem:[#allocation7 + $0x370] sm:$0xff]  ;;  %v359_v52 = vld [vmem:[#allocation7 + $0x378] sm:$0xff] }
 0x173   :  { %1900 = vmatmul.mubr.bf16.vlgmr.msra.gmra.mrb[4].mxu0 %v3625_v1  ;;  %1982 = vmatmul.mubr.bf16.vlgmr.msra.gmra.mrb[4].mxu1 %v3625_v1 }
 0x174   :  { %1991 = vmatpush1.bf16.msra.mxu0 %v2873_v5  ;;  %2022 = vmatprep.mubr.bf16.mxu0 %v3608_v45  ;;  %v2929_v5 = vcombine.low %v306_v57, %v310_v58  ;;  %v362_v57 = vld [vmem:[#allocation7 + $0x390] sm:$0xff] }
 0x175   :  { %2073 = vmatpush1.bf16.msra.mxu1 %v2875_v6  ;;  %2104 = vmatprep.mubr.bf16.mxu1 %v3608_v45  ;;  %v283_v45 = vld [vmem:[#allocation7 + $0x118] sm:$0xff]  ;;  %v2931_v6 = vcombine.low %v307_v59, %v311_v60  ;;  %v366_v58 = vld [vmem:[#allocation7 + $0x3b0] sm:$0xff] }
 0x176   :  { %1992 = vmatprep.subr.bf16.mxu0 %v2882_v7  ;;  %2074 = vmatprep.subr.bf16.mxu1 %v2884_v8  ;;  %v2908_v38 = vcombine.high %v283_v45, %v287_v33  ;;  %v2907_v44 = vcombine.low %v283_v45, %v287_v33  ;;  %v2938_v7 = vcombine.high %v314_v0, %v318_v2  ;;  %v339_v45 = vld [vmem:[#allocation7 + $0x2d8] sm:$0xff] }
 0x177   :  { %v2940_v8 = vcombine.high %v315_v3, %v319_v4  ;;  %v343_v33 = vld [vmem:[#allocation7 + $0x2f8] sm:$0xff] }
 0x178   :  { %1993 = vmatpush1.bf16.msra.mxu0 %v2881_v13  ;;  %v2937_v13 = vcombine.low %v314_v0, %v318_v2  ;;  %v363_v59 = vld [vmem:[#allocation7 + $0x398] sm:$0xff]  ;;  %v370_v0 = vld [vmem:[#allocation7 + $0x3d0] sm:$0xff] }
 0x179   :  { %2075 = vmatpush1.bf16.msra.mxu1 %v2883_v14  ;;  %1994 = vmatprep.subr.bf16.mxu0 %v2890_v15  ;;  %v2939_v14 = vcombine.low %v315_v3, %v319_v4  ;;  %v2946_v15 = vcombine.high %v322_v9, %v326_v10  ;;  %v367_v60 = vld [vmem:[#allocation7 + $0x3b8] sm:$0xff]  ;;  %v374_v2 = vld [vmem:[#allocation7 + $0x3f0] sm:$0xff] }
 0x17a   :  { %2076 = vmatprep.subr.bf16.mxu1 %v2892_v16  ;;  %v2948_v16 = vcombine.high %v323_v11, %v327_v12  ;;  %v371_v3 = vld [vmem:[#allocation7 + $0x3d8] sm:$0xff] }
 0x17b   :  { %v375_v4 = vld [vmem:[#allocation7 + $0x3f8] sm:$0xff] }
 0x17c   :  { %1995 = vmatpush1.bf16.msra.mxu0 %v2889_v25  ;;  %v2945_v25 = vcombine.low %v322_v9, %v326_v10  ;;  %v378_v9 = vld [vmem:[#allocation7 + $0x410] sm:$0xff] }
 0x17d   :  { %2077 = vmatpush1.bf16.msra.mxu1 %v2891_v27  ;;  %1996 = vmatprep.subr.bf16.mxu0 %v2898_v28  ;;  %v2947_v27 = vcombine.low %v323_v11, %v327_v12  ;;  %v2954_v28 = vcombine.high %v330_v17, %v334_v18  ;;  %v382_v10 = vld [vmem:[#allocation7 + $0x430] sm:$0xff]  ;;  %v379_v11 = vld [vmem:[#allocation7 + $0x418] sm:$0xff] }
 0x17e   :  { %2078 = vmatprep.subr.bf16.mxu1 %v2900_v29  ;;  %v2956_v29 = vcombine.high %v331_v19, %v335_v20  ;;  %v383_v12 = vld [vmem:[#allocation7 + $0x438] sm:$0xff] }
 0x180   :  { %1997 = vmatpush1.bf16.msra.mxu0 %v2897_v34  ;;  %v2953_v34 = vcombine.low %v330_v17, %v334_v18  ;;  %v386_v17 = vld [vmem:[#allocation7 + $0x450] sm:$0xff] }
 0x181   :  { %2079 = vmatpush1.bf16.msra.mxu1 %v2899_v35  ;;  %1998 = vmatprep.subr.bf16.mxu0 %v2906_v36  ;;  %v2955_v35 = vcombine.low %v331_v19, %v335_v20  ;;  %v2962_v36 = vcombine.high %v338_v31, %v342_v32  ;;  %v390_v18 = vld [vmem:[#allocation7 + $0x470] sm:$0xff]  ;;  %v3001_v19 = vcombine.low %v378_v9, %v382_v10  ;;  %v387_v20 = vld [vmem:[#allocation7 + $0x458] sm:$0xff] }
 0x182   :  { %2080 = vmatprep.subr.bf16.mxu1 %v2908_v38  ;;  %v2964_v38 = vcombine.high %v339_v45, %v343_v33 }
 0x184   :  { %1999 = vmatpush1.bf16.msra.mxu0 %v2905_v43  ;;  %v2961_v43 = vcombine.low %v338_v31, %v342_v32  ;;  %v398_v31 = vld [vmem:[#allocation7 + $0x4b0] sm:$0xff] }
 0x185   :  { %2081 = vmatpush1.bf16.msra.mxu1 %v2907_v44  ;;  %2000 = vmatprep.subr.bf16.mxu0 %v2914_v46  ;;  %v2963_v44 = vcombine.low %v339_v45, %v343_v33  ;;  %v2970_v46 = vcombine.high %v346_v39, %v350_v40  ;;  %v395_v45 = vld [vmem:[#allocation7 + $0x498] sm:$0xff] }
 0x186   :  { %2082 = vmatprep.subr.bf16.mxu1 %v2916_v48  ;;  %v2972_v48 = vcombine.high %v347_v41, %v351_v42  ;;  %v399_v33 = vld [vmem:[#allocation7 + $0x4b8] sm:$0xff] }
 0x188   :  { %2001 = vmatpush1.bf16.msra.mxu0 %v2913_v53  ;;  %v2969_v53 = vcombine.low %v346_v39, %v350_v40  ;;  %v402_v39 = vld [vmem:[#allocation7 + $0x4d0] sm:$0xff] }
 0x189   :  { %2083 = vmatpush1.bf16.msra.mxu1 %v2915_v23  ;;  %2002 = vmatprep.subr.bf16.mxu0 %v2922_v54  ;;  %v2971_v23 = vcombine.low %v347_v41, %v351_v42  ;;  %v2978_v54 = vcombine.high %v354_v49, %v358_v50  ;;  %v406_v40 = vld [vmem:[#allocation7 + $0x4f0] sm:$0xff]  ;;  %v403_v41 = vld [vmem:[#allocation7 + $0x4d8] sm:$0xff] }
 0x18a   :  { %2084 = vmatprep.subr.bf16.mxu1 %v2924_v56  ;;  %v2980_v56 = vcombine.high %v355_v51, %v359_v52  ;;  %v407_v42 = vld [vmem:[#allocation7 + $0x4f8] sm:$0xff] }
 0x18c   :  { %2003 = vmatpush1.bf16.msra.mxu0 %v2921_v61  ;;  %v2977_v61 = vcombine.low %v354_v49, %v358_v50  ;;  %v414_v49 = vld [vmem:[#allocation7 + $0x530] sm:$0xff]  ;;  %v411_v50 = vld [vmem:[#allocation7 + $0x518] sm:$0xff] }
 0x18d   :  { %2085 = vmatpush1.bf16.msra.mxu1 %v2923_v62  ;;  %2004 = vmatprep.subr.bf16.mxu0 %v2930_v37  ;;  %v2979_v62 = vcombine.low %v355_v51, %v359_v52  ;;  %v2986_v37 = vcombine.high %v362_v57, %v366_v58  ;;  %v415_v51 = vld [vmem:[#allocation7 + $0x538] sm:$0xff]  ;;  %v3027_v52 = vcombine.low %v403_v41, %v407_v42 }
 0x18e   :  { %2086 = vmatprep.subr.bf16.mxu1 %v2932_v63  ;;  %v2988_v63 = vcombine.high %v363_v59, %v367_v60 }
 0x190   :  { %2005 = vmatpush1.bf16.msra.mxu0 %v2929_v5  ;;  %v2985_v5 = vcombine.low %v362_v57, %v366_v58  ;;  %v419_v57 = vld [vmem:[#allocation7 + $0x558] sm:$0xff] }
 0x191   :  { %2087 = vmatpush1.bf16.msra.mxu1 %v2931_v6  ;;  %2006 = vmatprep.subr.bf16.mxu0 %v2938_v7  ;;  %v2987_v6 = vcombine.low %v363_v59, %v367_v60  ;;  %v2994_v7 = vcombine.high %v370_v0, %v374_v2  ;;  %v423_v58 = vld [vmem:[#allocation7 + $0x578] sm:$0xff]  ;;  %v3035_v60 = vcombine.low %v411_v50, %v415_v51 }
 0x192   :  { %2088 = vmatprep.subr.bf16.mxu1 %v2940_v8  ;;  %v2996_v8 = vcombine.high %v371_v3, %v375_v4 }
 0x194   :  { %2007 = vmatpush1.bf16.msra.mxu0 %v2937_v13  ;;  %v2993_v13 = vcombine.low %v370_v0, %v374_v2  ;;  %v427_v0 = vld [vmem:[#allocation7 + $0x598] sm:$0xff] }
 0x195   :  { %2089 = vmatpush1.bf16.msra.mxu1 %v2939_v14  ;;  %2008 = vmatprep.subr.bf16.mxu0 %v2946_v15  ;;  %v2995_v14 = vcombine.low %v371_v3, %v375_v4  ;;  %v3002_v15 = vcombine.high %v378_v9, %v382_v10  ;;  %v431_v2 = vld [vmem:[#allocation7 + $0x5b8] sm:$0xff]  ;;  %v3043_v4 = vcombine.low %v419_v57, %v423_v58 }
 0x196   :  { %2090 = vmatprep.subr.bf16.mxu1 %v2948_v16  ;;  %v3004_v16 = vcombine.high %v379_v11, %v383_v12  ;;  %v435_v9 = vld [vmem:[#allocation7 + $0x5d8] sm:$0xff] }
 0x197   :  { %v439_v10 = vld [vmem:[#allocation7 + $0x5f8] sm:$0xff] }
 0x198   :  { %2009 = vmatpush1.bf16.msra.mxu0 %v2945_v25  ;;  %v391_v25 = vld [vmem:[#allocation7 + $0x478] sm:$0xff] }
 0x199   :  { %2091 = vmatpush1.bf16.msra.mxu1 %v2947_v27  ;;  %2010 = vmatprep.subr.bf16.mxu0 %v2954_v28  ;;  %v3003_v27 = vcombine.low %v379_v11, %v383_v12  ;;  %v3010_v28 = vcombine.high %v386_v17, %v390_v18  ;;  %v3012_v32 = vcombine.high %v387_v20, %v391_v25 }
 0x19a   :  { %2092 = vmatprep.subr.bf16.mxu1 %v2956_v29  ;;  %v394_v29 = vld [vmem:[#allocation7 + $0x490] sm:$0xff]  ;;  %v3051_v12 = vcombine.low %v427_v0, %v431_v2 }
 0x19c   :  { %2011 = vmatpush1.bf16.msra.mxu0 %v2953_v34  ;;  %v3009_v34 = vcombine.low %v386_v17, %v390_v18  ;;  %v443_v17 = vld [vmem:[#allocation7 + $0x618] sm:$0xff] }
 0x19d   :  { %2093 = vmatpush1.bf16.msra.mxu1 %v2955_v35  ;;  %2012 = vmatprep.subr.bf16.mxu0 %v2962_v36  ;;  %v3011_v35 = vcombine.low %v387_v20, %v391_v25  ;;  %v3018_v36 = vcombine.high %v394_v29, %v398_v31  ;;  %v447_v18 = vld [vmem:[#allocation7 + $0x638] sm:$0xff]  ;;  %v3059_v20 = vcombine.low %v435_v9, %v439_v10 }
 0x19e   :  { %2094 = vmatprep.subr.bf16.mxu1 %v2964_v38  ;;  %v3020_v38 = vcombine.high %v395_v45, %v399_v33 }
 0x1a0   :  { %2013 = vmatpush1.bf16.msra.mxu0 %v2961_v43  ;;  %v3017_v43 = vcombine.low %v394_v29, %v398_v31  ;;  %v454_v29 = vld [vmem:[#allocation7 + $0x670] sm:$0xff]  ;;  %v451_v31 = vld [vmem:[#allocation7 + $0x658] sm:$0xff] }
 0x1a1   :  { %2095 = vmatpush1.bf16.msra.mxu1 %v2963_v44  ;;  %2014 = vmatprep.subr.bf16.mxu0 %v2970_v46  ;;  %v3026_v44 = vcombine.high %v402_v39, %v406_v40  ;;  %v3028_v46 = vcombine.high %v403_v41, %v407_v42 }
 0x1a2   :  { %2096 = vmatprep.subr.bf16.mxu1 %v2972_v48  ;;  %v410_v48 = vld [vmem:[#allocation7 + $0x510] sm:$0xff] }
 0x1a3   :  { %v3033_v59 = vcombine.low %v410_v48, %v414_v49 }
 0x1a4   :  { %2015 = vmatpush1.bf16.msra.mxu0 %v2969_v53  ;;  %v3034_v53 = vcombine.high %v410_v48, %v414_v49  ;;  %v467_v48 = vld [vmem:[#allocation7 + $0x6d8] sm:$0xff] }
 0x1a5   :  { %2097 = vmatpush1.bf16.msra.mxu1 %v2971_v23  ;;  %2016 = vmatprep.subr.bf16.mxu0 %v2978_v54  ;;  %v3036_v23 = vcombine.high %v411_v50, %v415_v51  ;;  %v418_v54 = vld [vmem:[#allocation7 + $0x550] sm:$0xff]  ;;  %v471_v49 = vld [vmem:[#allocation7 + $0x6f8] sm:$0xff] }
 0x1a6   :  { %2098 = vmatprep.subr.bf16.mxu1 %v2980_v56  ;;  %v422_v56 = vld [vmem:[#allocation7 + $0x570] sm:$0xff] }
 0x1a7   :  { %v3041_v3 = vcombine.low %v418_v54, %v422_v56 }
 0x1a8   :  { %2017 = vmatpush1.bf16.msra.mxu0 %v2977_v61  ;;  %v3042_v61 = vcombine.high %v418_v54, %v422_v56  ;;  %v475_v54 = vld [vmem:[#allocation7 + $0x718] sm:$0xff] }
 0x1a9   :  { %2099 = vmatpush1.bf16.msra.mxu1 %v2979_v62  ;;  %2018 = vmatprep.subr.bf16.mxu0 %v2986_v37  ;;  %v3044_v62 = vcombine.high %v419_v57, %v423_v58  ;;  %v426_v37 = vld [vmem:[#allocation7 + $0x590] sm:$0xff]  ;;  %v479_v56 = vld [vmem:[#allocation7 + $0x738] sm:$0xff]  ;;  %v3091_v58 = vcombine.low %v467_v48, %v471_v49 }
 0x1aa   :  { %2100 = vmatprep.subr.bf16.mxu1 %v2988_v63  ;;  %v430_v63 = vld [vmem:[#allocation7 + $0x5b0] sm:$0xff] }
 0x1ab   :  { %v3049_v11 = vcombine.low %v426_v37, %v430_v63 }
 0x1ac   :  { %2019 = vmatpush1.bf16.msra.mxu0 %v2985_v5  ;;  %v3050_v5 = vcombine.high %v426_v37, %v430_v63  ;;  %v483_v37 = vld [vmem:[#allocation7 + $0x758] sm:$0xff] }
 0x1ad   :  { %2101 = vmatpush1.bf16.msra.mxu1 %v2987_v6  ;;  %2020 = vmatprep.subr.bf16.mxu0 %v2994_v7  ;;  %v3052_v6 = vcombine.high %v427_v0, %v431_v2  ;;  %v434_v7 = vld [vmem:[#allocation7 + $0x5d0] sm:$0xff]  ;;  %v487_v63 = vld [vmem:[#allocation7 + $0x778] sm:$0xff]  ;;  %v3099_v2 = vcombine.low %v475_v54, %v479_v56 }
 0x1ae   :  { %2102 = vmatprep.subr.bf16.mxu1 %v2996_v8  ;;  %v438_v8 = vld [vmem:[#allocation7 + $0x5f0] sm:$0xff] }
 0x1b0   :  { %2021 = vmatpush1.bf16.msra.mxu0 %v2993_v13  ;;  %v3058_v13 = vcombine.high %v434_v7, %v438_v8 }
 0x1b1   :  { %2103 = vmatpush1.bf16.msra.mxu1 %v2995_v14  ;;  %2031 = vmatprep.subr.bf16.mxu0 %v3002_v15  ;;  %v3060_v14 = vcombine.high %v435_v9, %v439_v10  ;;  %v442_v15 = vld [vmem:[#allocation7 + $0x610] sm:$0xff]  ;;  %v3107_v10 = vcombine.low %v483_v37, %v487_v63 }
 0x1b2   :  { %2113 = vmatprep.subr.bf16.mxu1 %v3004_v16  ;;  %v446_v16 = vld [vmem:[#allocation7 + $0x630] sm:$0xff] }
 0x1b3   :  { %2023 = vmatmul.mubr.bf16.vlgmr.msra.gmra.mrb[8].mxu0 %v3610_v47  ;;  %v3066_v25 = vcombine.high %v442_v15, %v446_v16 }
 0x1b4   :  { %2105 = vmatmul.mubr.bf16.vlgmr.msra.gmra.mrb[8].mxu1 %v3610_v47  ;;  %2032 = vmatpush1.bf16.msra.mxu0 %v3001_v19  ;;  %v3019_v47 = vcombine.low %v395_v45, %v399_v33  ;;  %v3057_v19 = vcombine.low %v434_v7, %v438_v8  ;;  %v3065_v45 = vcombine.low %v442_v15, %v446_v16  ;;  %v491_v7 = vld [vmem:[#allocation7 + $0x798] sm:$0xff] }
 0x1b5   :  { %2063 = vmatprep.mubr.bf16.mxu0 %v3616_v55  ;;  %2114 = vmatpush1.bf16.msra.mxu1 %v3003_v27  ;;  %v3068_v27 = vcombine.high %v443_v17, %v447_v18  ;;  %v3067_v33 = vcombine.low %v443_v17, %v447_v18  ;;  %v495_v8 = vld [vmem:[#allocation7 + $0x7b8] sm:$0xff] }
 0x1b6   :  { %2145 = vmatprep.mubr.bf16.mxu1 %v3616_v55  ;;  %2033 = vmatprep.subr.bf16.mxu0 %v3010_v28  ;;  %v3025_v55 = vcombine.low %v402_v39, %v406_v40  ;;  %v450_v28 = vld [vmem:[#allocation7 + $0x650] sm:$0xff]  ;;  %v459_v39 = vld [vmem:[#allocation7 + $0x698] sm:$0xff]  ;;  %v3115_v18 = vcombine.low %v491_v7, %v495_v8 }
 0x1b7   :  { %2115 = vmatprep.subr.bf16.mxu1 %v3012_v32  ;;  %v455_v32 = vld [vmem:[#allocation7 + $0x678] sm:$0xff]  ;;  %v3073_v41 = vcombine.low %v450_v28, %v454_v29 }
 0x1b8   :  { %2034 = vmatpush1.bf16.msra.mxu0 %v3009_v34  ;;  %v3074_v34 = vcombine.high %v450_v28, %v454_v29  ;;  %v463_v40 = vld [vmem:[#allocation7 + $0x6b8] sm:$0xff]  ;;  %v3075_v42 = vcombine.low %v451_v31, %v455_v32  ;;  %v3325_v28 = vld [vmem:[#allocation8 + $0x40] sm:$0xff]  }
 0x1b9   :  { %2116 = vmatpush1.bf16.msra.mxu1 %v3011_v35  ;;  %2035 = vmatprep.subr.bf16.mxu0 %v3018_v36  ;;  %v3076_v35 = vcombine.high %v451_v31, %v455_v32  ;;  %v458_v36 = vld [vmem:[#allocation7 + $0x690] sm:$0xff]  ;;  %v3083_v51 = vcombine.low %v459_v39, %v463_v40  ;;  %v499_v15 = vld [vmem:[#allocation7 + $0x7d8] sm:$0xff]  ;;  %v3326_v29 = vld [vmem:[#allocation8 + $0xc0] sm:$0xff]  }
 0x1ba   :  { %2117 = vmatprep.subr.bf16.mxu1 %v3020_v38  ;;  %v462_v38 = vld [vmem:[#allocation7 + $0x6b0] sm:$0xff]  ;;  %v503_v16 = vld [vmem:[#allocation7 + $0x7f8] sm:$0xff]  ;;  %v3327_v31 = vld [vmem:[#allocation8] sm:$0xff]  }
 0x1bb   :  { %v3081_v50 = vcombine.low %v458_v36, %v462_v38  ;;  %v3328_v32 = vld [vmem:[#allocation8 + $0x80] sm:$0xff]  }
 0x1bc   :  { %2036 = vmatpush1.bf16.msra.mxu0 %v3017_v43  ;;  %v3082_v43 = vcombine.high %v458_v36, %v462_v38  ;;  %v3333_v36 = vld [vmem:[#allocation8 + $0x50] sm:$0xff]  }
 0x1bd   :  { %2118 = vmatpush1.bf16.msra.mxu1 %v3019_v47  ;;  %2037 = vmatprep.subr.bf16.mxu0 %v3026_v44  ;;  %v3084_v47 = vcombine.high %v459_v39, %v463_v40  ;;  %v466_v44 = vld [vmem:[#allocation7 + $0x6d0] sm:$0xff] }
 0x1be   :  { %2119 = vmatprep.subr.bf16.mxu1 %v3028_v46  ;;  %v470_v46 = vld [vmem:[#allocation7 + $0x6f0] sm:$0xff] }
 0x1bf   :  { %v3089_v57 = vcombine.low %v466_v44, %v470_v46  ;;  %v3334_v38 = vld [vmem:[#allocation8 + $0xd0] sm:$0xff]  }
 0x1c0   :  { %2038 = vmatpush1.bf16.msra.mxu0 %v3025_v55  ;;  %v3090_v55 = vcombine.high %v466_v44, %v470_v46  ;;  %v3335_v39 = vld [vmem:[#allocation8 + $0x10] sm:$0xff]   ;;  %v3342_v44 = vld [vmem:[#allocation8 + $0xe0] sm:$0xff]  }
 0x1c1   :  { %2120 = vmatpush1.bf16.msra.mxu1 %v3027_v52  ;;  %2039 = vmatprep.subr.bf16.mxu0 %v3034_v53  ;;  %v3092_v52 = vcombine.high %v467_v48, %v471_v49  ;;  %v474_v53 = vld [vmem:[#allocation7 + $0x710] sm:$0xff]  ;;  %v3343_v46 = vld [vmem:[#allocation8 + $0x20] sm:$0xff]   ;;  %v3345_v49 = vld [vmem:[#allocation8 + $0x68] sm:$0xff]  }
 0x1c2   :  { %2121 = vmatprep.subr.bf16.mxu1 %v3036_v23  ;;  %v478_v23 = vld [vmem:[#allocation7 + $0x730] sm:$0xff]  ;;  %v3344_v48 = vld [vmem:[#allocation8 + $0xa0] sm:$0xff]  }
 0x1c3   :  { %v3097_v0 = vcombine.low %v474_v53, %v478_v23  ;;  %v3336_v40 = vld [vmem:[#allocation8 + $0x90] sm:$0xff]  }
 0x1c4   :  { %2040 = vmatpush1.bf16.msra.mxu0 %v3033_v59  ;;  %v3098_v59 = vcombine.high %v474_v53, %v478_v23  ;;  %v3350_v53 = vld [vmem:[#allocation8 + $0xf0] sm:$0xff]  }
 0x1c5   :  { %2122 = vmatpush1.bf16.msra.mxu1 %v3035_v60  ;;  %2041 = vmatprep.subr.bf16.mxu0 %v3042_v61  ;;  %v3100_v60 = vcombine.high %v475_v54, %v479_v56  ;;  %v482_v61 = vld [vmem:[#allocation7 + $0x750] sm:$0xff]  ;;  %v3353_v56 = vld [vmem:[#allocation8 + $0x78] sm:$0xff]  }
 0x1c6   :  { %2123 = vmatprep.subr.bf16.mxu1 %v3044_v62  ;;  %v486_v62 = vld [vmem:[#allocation7 + $0x770] sm:$0xff] }
 0x1c7   :  { %v3105_v9 = vcombine.low %v482_v61, %v486_v62  ;;  %v3351_v23 = vld [vmem:[#allocation8 + $0x30] sm:$0xff]  }
 0x1c8   :  { %2042 = vmatpush1.bf16.msra.mxu0 %v3041_v3  ;;  %v3106_v3 = vcombine.high %v482_v61, %v486_v62  ;;  %v3352_v54 = vld [vmem:[#allocation8 + $0xb0] sm:$0xff]   ;;  %v3358_v61 = vld [vmem:[#allocation8 + $0x1c0] sm:$0xff]  }
 0x1c9   :  { %2124 = vmatpush1.bf16.msra.mxu1 %v3043_v4  ;;  %2043 = vmatprep.subr.bf16.mxu0 %v3050_v5  ;;  %v3108_v4 = vcombine.high %v483_v37, %v487_v63  ;;  %v490_v5 = vld [vmem:[#allocation7 + $0x790] sm:$0xff] }
 0x1ca   :  { %2125 = vmatprep.subr.bf16.mxu1 %v3052_v6  ;;  %v494_v6 = vld [vmem:[#allocation7 + $0x7b0] sm:$0xff] }
 0x1cb   :  { %v3113_v17 = vcombine.low %v490_v5, %v494_v6  ;;  %v3640_v62 = vld [vmem:[%s3669_s4] sm:$0xff] }
 0x1cc   :  { %2044 = vmatpush1.bf16.msra.mxu0 %v3049_v11  ;;  %v3114_v11 = vcombine.high %v490_v5, %v494_v6  ;;  %v509_v37 = vrot.slane %v3640_v62, %v96_v22  ;;  %v517_v63 = vrot.slane %v3640_v62, %v104_v30 }
 0x1cd   :  { %2126 = vmatpush1.bf16.msra.mxu1 %v3051_v12  ;;  %2045 = vmatprep.subr.bf16.mxu0 %v3058_v13  ;;  %v3116_v12 = vcombine.high %v491_v7, %v495_v8  ;;  %v498_v13 = vld [vmem:[#allocation7 + $0x7d0] sm:$0xff] }
 0x1ce   :  { %2127 = vmatprep.subr.bf16.mxu1 %v3060_v14  ;;  %v502_v14 = vld [vmem:[#allocation7 + $0x7f0] sm:$0xff] }
 0x1d0   :  { %2046 = vmatpush1.bf16.msra.mxu0 %v3057_v19  ;;  %v3122_v19 = vcombine.high %v498_v13, %v502_v14 }
 0x1d1   :  { %2128 = vmatpush1.bf16.msra.mxu1 %v3059_v20  ;;  %2047 = vmatprep.subr.bf16.mxu0 %v3066_v25  ;;  %v3124_v20 = vcombine.high %v499_v15, %v503_v16  ;;  %v3121_v25 = vcombine.low %v498_v13, %v502_v14 }
 0x1d2   :  { %2129 = vmatprep.subr.bf16.mxu1 %v3068_v27  ;;  %v3123_v27 = vcombine.low %v499_v15, %v503_v16 }
 0x1d4   :  { %2048 = vmatpush1.bf16.msra.mxu0 %v3065_v45  ;;  %v3329_v45 = vld [vmem:[#allocation8 + $0x48] sm:$0xff]  }
 0x1d5   :  { %2130 = vmatpush1.bf16.msra.mxu1 %v3067_v33  ;;  %2049 = vmatprep.subr.bf16.mxu0 %v3074_v34  ;;  %v3330_v33 = vld [vmem:[#allocation8 + $0xc8] sm:$0xff]  }
 0x1d6   :  { %2131 = vmatprep.subr.bf16.mxu1 %v3076_v35  ;;  %v3331_v34 = vld [vmem:[#allocation8 + $0x8] sm:$0xff]  }
 0x1d7   :  { %v3332_v35 = vld [vmem:[#allocation8 + $0x88] sm:$0xff]  }
 0x1d8   :  { %2050 = vmatpush1.bf16.msra.mxu0 %v3073_v41  ;;  %v3337_v41 = vld [vmem:[#allocation8 + $0x58] sm:$0xff]  }
 0x1d9   :  { %2132 = vmatpush1.bf16.msra.mxu1 %v3075_v42  ;;  %2051 = vmatprep.subr.bf16.mxu0 %v3082_v43  ;;  %v3338_v42 = vld [vmem:[#allocation8 + $0xd8] sm:$0xff]  }
 0x1da   :  { %2133 = vmatprep.subr.bf16.mxu1 %v3084_v47  ;;  %v3339_v43 = vld [vmem:[#allocation8 + $0x18] sm:$0xff]   ;;  %v3341_v47 = vld [vmem:[#allocation8 + $0x60] sm:$0xff]  }
 0x1dc   :  { %2052 = vmatpush1.bf16.msra.mxu0 %v3081_v50  ;;  %v3346_v50 = vld [vmem:[#allocation8 + $0xe8] sm:$0xff]  }
 0x1dd   :  { %2134 = vmatpush1.bf16.msra.mxu1 %v3083_v51  ;;  %2053 = vmatprep.subr.bf16.mxu0 %v3090_v55  ;;  %v3347_v51 = vld [vmem:[#allocation8 + $0x28] sm:$0xff]  }
 0x1de   :  { %2135 = vmatprep.subr.bf16.mxu1 %v3092_v52  ;;  %v3348_v55 = vld [vmem:[#allocation8 + $0xa8] sm:$0xff]   ;;  %v3349_v52 = vld [vmem:[#allocation8 + $0x70] sm:$0xff]  }
 0x1e0   :  { %2054 = vmatpush1.bf16.msra.mxu0 %v3089_v57  ;;  %v3354_v57 = vld [vmem:[#allocation8 + $0xf8] sm:$0xff]  }
 0x1e1   :  { %2136 = vmatpush1.bf16.msra.mxu1 %v3091_v58  ;;  %2055 = vmatprep.subr.bf16.mxu0 %v3098_v59  ;;  %v3355_v58 = vld [vmem:[#allocation8 + $0x38] sm:$0xff]  }
 0x1e2   :  { %2137 = vmatprep.subr.bf16.mxu1 %v3100_v60  ;;  %v3356_v59 = vld [vmem:[#allocation8 + $0xb8] sm:$0xff]   ;;  %v3357_v60 = vld [vmem:[#allocation8 + $0x140] sm:$0xff]  }
 0x1e4   :  { %2056 = vmatpush1.bf16.msra.mxu0 %v3097_v0  ;;  %v513_v0 = vrot.slane %v3640_v62, %v100_v24 }
 0x1e5   :  { %2138 = vmatpush1.bf16.msra.mxu1 %v3099_v2  ;;  %2057 = vmatprep.subr.bf16.mxu0 %v3106_v3  ;;  %v521_v2 = vrot.slane %v3640_v62, %v108_v26  ;;  %v3360_v26 = vld [vmem:[#allocation8 + $0x180] sm:$0xff]  }
 0x1e6   :  { %2139 = vmatprep.subr.bf16.mxu1 %v3108_v4 }
 0x1e8   :  { %2058 = vmatpush1.bf16.msra.mxu0 %v3105_v9 }
 0x1e9   :  { %2140 = vmatpush1.bf16.msra.mxu1 %v3107_v10  ;;  %2059 = vmatprep.subr.bf16.mxu0 %v3114_v11 }
 0x1ea   :  { %2141 = vmatprep.subr.bf16.mxu1 %v3116_v12 }
 0x1ec   :  { %2060 = vmatpush1.bf16.msra.mxu0 %v3113_v17 }
 0x1ed   :  { %2142 = vmatpush1.bf16.msra.mxu1 %v3115_v18  ;;  %2061 = vmatprep.subr.bf16.mxu0 %v3122_v19  ;;  %v3359_v18 = vld [vmem:[#allocation8 + $0x100] sm:$0xff]  }
 0x1ee   :  { %2143 = vmatprep.subr.bf16.mxu1 %v3124_v20 }
 0x1f0   :  { %2062 = vmatpush1.bf16.msra.mxu0 %v3121_v25  ;;  %v3361_v25 = vld [vmem:[#allocation8 + $0x148] sm:$0xff]  }
 0x1f1   :  { %2144 = vmatpush1.bf16.msra.mxu1 %v3123_v27  ;;  %3190 = vmatprep.subr.bf16.mxu0 %v3325_v28  ;;  %v3362_v27 = vld [vmem:[#allocation8 + $0x1c8] sm:$0xff]  }
 0x1f2   :  { %3212 = vmatprep.subr.bf16.mxu1 %v3326_v29  ;;  %v3363_v28 = vld [vmem:[#allocation8 + $0x108] sm:$0xff]  }
 0x1f3   :  { %2064 = vmatmul.mubr.bf16.vlgmr.msra.gmra.mrb[8].mxu0 %v3625_v1  ;;  %v3364_v29 = vld [vmem:[#allocation8 + $0x188] sm:$0xff]  }
 0x1f4   :  { %2146 = vmatmul.mubr.bf16.vlgmr.msra.gmra.mrb[8].mxu1 %v3625_v1  ;;  %3191 = vmatpush3.bf16.msra.mxu0 %v3327_v31  ;;  %v3340_v1 = vld [vmem:[#allocation8 + $0x98] sm:$0xff]   ;;  %v3365_v31 = vld [vmem:[#allocation8 + $0x150] sm:$0xff]  }
 0x1f5   :  { %3213 = vmatpush3.bf16.msra.mxu1 %v3328_v32  ;;  %3192 = vmatprep.subr.bf16.mxu0 %v3329_v45  ;;  %v3366_v32 = vld [vmem:[#allocation8 + $0x1d0] sm:$0xff]  }
 0x1f6   :  { %3214 = vmatprep.subr.bf16.mxu1 %v3330_v33  ;;  %v3367_v45 = vld [vmem:[#allocation8 + $0x110] sm:$0xff]  }
 0x1f7   :  { %v3368_v33 = vld [vmem:[#allocation8 + $0x190] sm:$0xff]  }
 0x1f8   :  { %3193 = vmatpush3.bf16.msra.mxu0 %v3331_v34  ;;  %v3369_v34 = vld [vmem:[#allocation8 + $0x158] sm:$0xff]  }
 0x1f9   :  { %3215 = vmatpush3.bf16.msra.mxu1 %v3332_v35  ;;  %3194 = vmatprep.subr.bf16.mxu0 %v3333_v36  ;;  %v3370_v35 = vld [vmem:[#allocation8 + $0x1d8] sm:$0xff]  }
 0x1fa   :  { %3216 = vmatprep.subr.bf16.mxu1 %v3334_v38  ;;  %v3371_v36 = vld [vmem:[#allocation8 + $0x118] sm:$0xff]  }
 0x1fb   :  { %v3372_v38 = vld [vmem:[#allocation8 + $0x198] sm:$0xff]  }
 0x1fc   :  { %3195 = vmatpush3.bf16.msra.mxu0 %v3335_v39  ;;  %v3373_v39 = vld [vmem:[#allocation8 + $0x160] sm:$0xff]  }
 0x1fd   :  { %3217 = vmatpush3.bf16.msra.mxu1 %v3336_v40  ;;  %3196 = vmatprep.subr.bf16.mxu0 %v3337_v41  ;;  %v3374_v40 = vld [vmem:[#allocation8 + $0x1e0] sm:$0xff]  }
 0x1fe   :  { %3218 = vmatprep.subr.bf16.mxu1 %v3338_v42  ;;  %v3375_v41 = vld [vmem:[#allocation8 + $0x120] sm:$0xff]  }
 0x1ff   :  { %v3376_v42 = vld [vmem:[#allocation8 + $0x1a0] sm:$0xff]  }
 0x200   :  { %3197 = vmatpush3.bf16.msra.mxu0 %v3339_v43  ;;  %v3377_v43 = vld [vmem:[#allocation8 + $0x168] sm:$0xff]  }
 0x201   :  { %3219 = vmatpush3.bf16.msra.mxu1 %v3340_v1  ;;  %3198 = vmatprep.subr.bf16.mxu0 %v3341_v47  ;;  %v3378_v1 = vld [vmem:[#allocation8 + $0x1e8] sm:$0xff]  }
 0x202   :  { %3220 = vmatprep.subr.bf16.mxu1 %v3342_v44  ;;  %v3379_v47 = vld [vmem:[#allocation8 + $0x128] sm:$0xff]  }
 0x203   :  { %v3380_v44 = vld [vmem:[#allocation8 + $0x1a8] sm:$0xff]  }
 0x204   :  { %3199 = vmatpush3.bf16.msra.mxu0 %v3343_v46  ;;  %v3381_v46 = vld [vmem:[#allocation8 + $0x170] sm:$0xff]  }
 0x205   :  { %3221 = vmatpush3.bf16.msra.mxu1 %v3344_v48  ;;  %3200 = vmatprep.subr.bf16.mxu0 %v3345_v49  ;;  %v3382_v48 = vld [vmem:[#allocation8 + $0x1f0] sm:$0xff]  }
 0x206   :  { %3222 = vmatprep.subr.bf16.mxu1 %v3346_v50  ;;  %v3383_v49 = vld [vmem:[#allocation8 + $0x130] sm:$0xff]  }
 0x207   :  { %v3384_v50 = vld [vmem:[#allocation8 + $0x1b0] sm:$0xff]  }
 0x208   :  { %3201 = vmatpush3.bf16.msra.mxu0 %v3347_v51  ;;  %v3385_v51 = vld [vmem:[#allocation8 + $0x178] sm:$0xff]  }
 0x209   :  { %3223 = vmatpush3.bf16.msra.mxu1 %v3348_v55  ;;  %3202 = vmatprep.subr.bf16.mxu0 %v3349_v52  ;;  %v3386_v55 = vld [vmem:[#allocation8 + $0x1f8] sm:$0xff]  }
 0x20a   :  { %3224 = vmatprep.subr.bf16.mxu1 %v3350_v53  ;;  %v3387_v52 = vld [vmem:[#allocation8 + $0x138] sm:$0xff]  }
 0x20b   :  { %v3388_v53 = vld [vmem:[#allocation8 + $0x1b8] sm:$0xff]  }
 0x20c   :  { %3203 = vmatpush3.bf16.msra.mxu0 %v3351_v23  ;;  %v524_v23 = vsub.s32 4, %v3587_v21 }
 0x20d   :  { %3225 = vmatpush3.bf16.msra.mxu1 %v3352_v54  ;;  %3204 = vmatprep.subr.bf16.mxu0 %v3353_v56  ;;  %v532_v54 = vsub.s32 6, %v3587_v21  ;;  %v528_v56 = vsub.s32 5, %v3587_v21 }
 0x20e   :  { %3226 = vmatprep.subr.bf16.mxu1 %v3354_v57  ;;  %v536_v57 = vsub.s32 7, %v3587_v21 }
 0x210   :  { %3205 = vmatpush3.bf16.msra.mxu0 %v3355_v58  ;;  %v525_v58 = vrot.slane %v3640_v62, %v524_v23 }
 0x211   :  { %3227 = vmatpush3.bf16.msra.mxu1 %v3356_v59  ;;  %3234 = vmatprep.subr.bf16.mxu0 %v3357_v60  ;;  %v533_v59 = vrot.slane %v3640_v62, %v532_v54  ;;  %v529_v60 = vrot.slane %v3640_v62, %v528_v56 }
 0x212   :  { %3256 = vmatprep.subr.bf16.mxu1 %v3358_v61  ;;  %v537_v61 = vrot.slane %v3640_v62, %v536_v57 }
 0x246   :  { %v1901_v3 = vpop.f32.mrb[4].mxu0  ;;  %v1983_v4 = vpop.f32.mrb[4].mxu1 }
 0x247   :  { %v3278_v5 = vadd.f32 %v1901_v3, %v509_v37  ;;  %v3280_v6 = vadd.f32 %v1983_v4, %v517_v63  ;;  %v1903_v7 = vpop.f32.mrb[5].mxu0  ;;  %v1985_v8 = vpop.f32.mrb[5].mxu1 }
 0x248   :  { %v3279_v9 = vadd.f32 %v1903_v7, %v513_v0  ;;  %v3281_v22 = vadd.f32 %v1985_v8, %v521_v2  ;;  %v1905_v10 = vpop.f32.mrb[6].mxu0  ;;  %v1987_v11 = vpop.f32.mrb[6].mxu1 }
 0x249   :  { %v2154_v12 = vmax.f32 %v3278_v5, 0.0  ;;  %v2156_v30 = vmax.f32 %v3280_v6, 0.0  ;;  %v1906_v13 = vpop.f32.mrb[7].mxu0  ;;  %v1988_v14 = vpop.f32.mrb[7].mxu1 }
 0x24a   :  { %v2155_v15 = vmax.f32 %v3279_v9, 0.0  ;;  %v2157_v24 = vmax.f32 %v3281_v22, 0.0 }
 0x24b   :  { %v2162_v19 = vpack.c.bf16 %v2154_v12, %v2154_v12  ;;  %v2164_v20 = vpack.c.bf16 %v2156_v30, %v2156_v30 }
 0x24c   :  { %v2163_v16 = vpack.c.bf16 %v2155_v15, %v2155_v15  ;;  %v2165_v17 = vpack.c.bf16 %v2157_v24, %v2157_v24 }
 0x24e   :  { %2714 = vmatprep.mubr.bf16.mxu0 %v2163_v16  ;;  %2754 = vmatprep.mubr.bf16.mxu1 %v2165_v17 }
 0x24f   :  { %2715 = vmatmul.mubr.bf16.vlgmr.msra.gmra.mrb[12].mxu0 %v2162_v19  ;;  %2755 = vmatmul.mubr.bf16.vlgmr.msra.gmra.mrb[12].mxu1 %v2164_v20 }
 0x250   :  { %3235 = vmatpush3.bf16.msra.mxu0 %v3359_v18  ;;  %3257 = vmatpush3.bf16.msra.mxu1 %v3360_v26 }
 0x251   :  { %3236 = vmatprep.subr.bf16.mxu0 %v3361_v25  ;;  %3258 = vmatprep.subr.bf16.mxu1 %v3362_v27 }
 0x254   :  { %3237 = vmatpush3.bf16.msra.mxu0 %v3363_v28  ;;  %3259 = vmatpush3.bf16.msra.mxu1 %v3364_v29 }
 0x255   :  { %3238 = vmatprep.subr.bf16.mxu0 %v3365_v31  ;;  %3260 = vmatprep.subr.bf16.mxu1 %v3366_v32 }
 0x258   :  { %3239 = vmatpush3.bf16.msra.mxu0 %v3367_v45  ;;  %3261 = vmatpush3.bf16.msra.mxu1 %v3368_v33 }
 0x259   :  { %3240 = vmatprep.subr.bf16.mxu0 %v3369_v34  ;;  %3262 = vmatprep.subr.bf16.mxu1 %v3370_v35 }
 0x25c   :  { %3241 = vmatpush3.bf16.msra.mxu0 %v3371_v36  ;;  %3263 = vmatpush3.bf16.msra.mxu1 %v3372_v38 }
 0x25d   :  { %3242 = vmatprep.subr.bf16.mxu0 %v3373_v39  ;;  %3264 = vmatprep.subr.bf16.mxu1 %v3374_v40 }
 0x260   :  { %3243 = vmatpush3.bf16.msra.mxu0 %v3375_v41  ;;  %3265 = vmatpush3.bf16.msra.mxu1 %v3376_v42  ;;  %v3189_v41 = vld [vmem:[#allocation2] ss:$0 sm:$0xff] }
 0x261   :  { %3244 = vmatprep.subr.bf16.mxu0 %v3377_v43  ;;  %3266 = vmatprep.subr.bf16.mxu1 %v3378_v1 }
 0x264   :  { %3245 = vmatpush3.bf16.msra.mxu0 %v3379_v47  ;;  %3267 = vmatpush3.bf16.msra.mxu1 %v3380_v44 }
 0x265   :  { %3246 = vmatprep.subr.bf16.mxu0 %v3381_v46  ;;  %3268 = vmatprep.subr.bf16.mxu1 %v3382_v48 }
 0x268   :  { %3247 = vmatpush3.bf16.msra.mxu0 %v3383_v49  ;;  %3269 = vmatpush3.bf16.msra.mxu1 %v3384_v50 }
 0x269   :  { %3248 = vmatprep.subr.bf16.mxu0 %v3385_v51  ;;  %3270 = vmatprep.subr.bf16.mxu1 %v3386_v55 }
 0x26c   :  { %3249 = vmatpush3.bf16.msra.mxu0 %v3387_v52  ;;  %3271 = vmatpush3.bf16.msra.mxu1 %v3388_v53 }
 0x2c6   :  { %v2065_v37 = vpop.f32.mrb[8].mxu0 }
 0x2c7   :  { %v3282_v63 = vadd.f32 %v2065_v37, %v525_v58  ;;  %v2147_v0 = vpop.f32.mrb[8].mxu1  ;;  %v2067_v2 = vpop.f32.mrb[9].mxu0 }
 0x2c8   :  { %v3284_v3 = vadd.f32 %v2147_v0, %v533_v59  ;;  %v3283_v4 = vadd.f32 %v2067_v2, %v529_v60  ;;  %v2149_v5 = vpop.f32.mrb[9].mxu1  ;;  %v2069_v6 = vpop.f32.mrb[10].mxu0 }
 0x2c9   :  { %v2158_v7 = vmax.f32 %v3282_v63, 0.0  ;;  %v3285_v8 = vadd.f32 %v2149_v5, %v537_v61  ;;  %v2151_v9 = vpop.f32.mrb[10].mxu1  ;;  %v2070_v21 = vpop.f32.mrb[11].mxu0 }
 0x2ca   :  { %v2160_v22 = vmax.f32 %v3284_v3, 0.0  ;;  %v2159_v10 = vmax.f32 %v3283_v4, 0.0  ;;  %v2152_v11 = vpop.f32.mrb[11].mxu1 }
 0x2cb   :  { %v2161_v12 = vmax.f32 %v3285_v8, 0.0  ;;  %v2166_v13 = vpack.c.bf16 %v2158_v7, %v2158_v7 }
 0x2cc   :  { %v2167_v30 = vpack.c.bf16 %v2159_v10, %v2159_v10  ;;  %v2168_v62 = vpack.c.bf16 %v2160_v22, %v2160_v22 }
 0x2cd   :  { %v2169_v14 = vpack.c.bf16 %v2161_v12, %v2161_v12 }
 0x2ce   :  { %2794 = vmatprep.mubr.bf16.mxu0 %v2167_v30 }
 0x2cf   :  { %2834 = vmatprep.mubr.bf16.mxu1 %v2169_v14  ;;  %2795 = vmatmul.mubr.bf16.vlgmr.msra.gmra.mrb[16].mxu0 %v2166_v13 }
 0x2d0   :  { %2835 = vmatmul.mubr.bf16.vlgmr.msra.gmra.mrb[16].mxu1 %v2168_v62 }
 0x322   :  { %v3206_v15 = vpop.f32.mrb[12].mxu0  ;;  %v3228_v24 = vpop.f32.mrb[12].mxu1 }
 0x323   :  { %v3207_v16 = vpop.f32.mrb[13].mxu0  ;;  %v3229_v17 = vpop.f32.mrb[13].mxu1 }
 0x324   :  { %v3208_v18 = vadd.f32 %v3207_v16, %v3206_v15  ;;  %v3230_v26 = vadd.f32 %v3229_v17, %v3228_v24  ;;  %v3209_v19 = vpop.f32.mrb[14].mxu0  ;;  %v3231_v20 = vpop.f32.mrb[14].mxu1 }
 0x325   :  { %v3210_v25 = vpop.f32.mrb[15].mxu0  ;;  %v3232_v27 = vpop.f32.mrb[15].mxu1 }
 0x326   :  { %v2757_v28 = vadd.f32 %v3230_v26, %v3208_v18 }
 0x3a2   :  { %v3250_v29 = vpop.f32.mrb[16].mxu0 }
 0x3a3   :  { %v3272_v31 = vpop.f32.mrb[16].mxu1  ;;  %v3251_v32 = vpop.f32.mrb[17].mxu0 }
 0x3a4   :  { %v3252_v45 = vadd.f32 %v3251_v32, %v3250_v29  ;;  %v3273_v33 = vpop.f32.mrb[17].mxu1  ;;  %v3253_v34 = vpop.f32.mrb[18].mxu0 }
 0x3a5   :  { %v3274_v35 = vadd.f32 %v3273_v33, %v3272_v31  ;;  %v3275_v36 = vpop.f32.mrb[18].mxu1  ;;  %v3254_v38 = vpop.f32.mrb[19].mxu0 }
 0x3a6   :  { %v2797_v39 = vadd.f32 %v3252_v45, %v2757_v28  ;;  %v3276_v40 = vpop.f32.mrb[19].mxu1 }
 0x3a8   :  { %v2837_v42 = vadd.f32 %v3274_v35, %v2797_v39 }
 0x3aa   :  { %v2849_v43 = vadd.f32 %v3189_v41, %v2837_v42 }
 0x3ac   :  { %2851 = vst.msk [vmem:[%s3672_s7] sm:$0xff] %vm2850_vm1, %v2849_v43 }
 0x3ad   :  { %2856 = vsyncpa [#allocation4], 1 }
 0x3ae   :  { %2857 = vsyncpa [#allocation6], 1 }
 0x3af   :  { %2858 = vsyncpa [#allocation9], 1 }

</bundles_post_ra>
